<compile_context>
chip_gen: v6e
topology: v6e:2x2x1
jax: 0.10.0
libtpu: 0.0.40
codegen_flags: <defaults>
</compile_context>

<pallas_src>
import functools

import jax
import jax.numpy as jnp
from jax.experimental import pallas as pl
from jax.experimental.pallas import tpu as pltpu

LATENT_DIM = 10          # module hyper-parameter
HIDDEN = 500             # self.hidden_units
OUT = 2

# padded (lane-aligned) sizes used inside the kernel
LATENT_PAD = 128
HIDDEN_PAD = 512
OUT_PAD = 128
MAX_BATCH_TILE = 256     # M dimension fed to the MXU (fills 256x256 on v6e/v7x)

_PAD_IN = (LATENT_PAD,) + (HIDDEN_PAD,) * 5
_PAD_OUT = (HIDDEN_PAD,) * 5 + (OUT_PAD,)


def _round_up(x, m):
    return ((x + m - 1) // m) * m


def _leaky_relu(x, slope=0.2):
    return jnp.where(x > 0, x, slope * x)


def _mlp_kernel(z_ref, *refs):
    # refs = (w1, b1, w2, b2, ..., w6, b6, out)
    out_ref = refs[-1]
    wb = refs[:-1]
    n_layers = len(wb) // 2

    h = z_ref[...]                               # f32 (tile, LATENT_PAD)
    for i in range(n_layers):
        w = wb[2 * i][...]                       # bf16 (in_pad, out_pad)
        b = wb[2 * i + 1][...]                   # f32  (1, out_pad)
        acc = jnp.dot(h.astype(jnp.bfloat16), w,
                      preferred_element_type=jnp.float32) + b
        h = _leaky_relu(acc) if i < n_layers - 1 else acc
    out_ref[...] = h


def init_params(key, latent_dim=LATENT_DIM, hidden=HIDDEN, out=OUT):
    """Deterministic init matching PyTorch Linear shapes (stored as (in, out))."""
    dims = [latent_dim, hidden, hidden, hidden, hidden, hidden, out]
    params = []
    for i in range(6):
        key, kw, kb = jax.random.split(key, 3)
        fan_in = dims[i]
        bound = 1.0 / jnp.sqrt(fan_in)
        w = jax.random.uniform(kw, (dims[i], dims[i + 1]), jnp.float32,
                               -bound, bound)
        b = jax.random.uniform(kb, (dims[i + 1],), jnp.float32, -bound, bound)
        params.append((w, b))
    return params


def prepare_params(params):
    """One-time padding + bf16 cast of the weights (outside the jitted forward)."""
    flat = []
    for (w, b), pi, po in zip(params, _PAD_IN, _PAD_OUT):
        w_p = jnp.pad(w.astype(jnp.float32),
                      ((0, pi - w.shape[0]), (0, po - w.shape[1])))
        b_p = jnp.pad(b.astype(jnp.float32)[None, :],
                      ((0, 0), (0, po - b.shape[0])))
        flat.append(w_p.astype(jnp.bfloat16))    # weights streamed as bf16
        flat.append(b_p)                         # biases stay f32 (tiny)
    return tuple(flat)


@functools.partial(jax.jit, static_argnames=("latent_dim",))
def factorvae_discriminator_forward(z, padded_params, latent_dim=LATENT_DIM):
    """z: (B, latent_dim) float32 -> logits (B, 2) float32."""
    B = z.shape[0]
    batch_tile = min(MAX_BATCH_TILE, _round_up(B, 8))
    B_pad = _round_up(B, batch_tile)

    z_p = jnp.pad(z.astype(jnp.float32),
                  ((0, B_pad - B), (0, LATENT_PAD - latent_dim)))

    grid = (B_pad // batch_tile,)

    z_spec = pl.BlockSpec((batch_tile, LATENT_PAD), lambda i: (i, 0))
    w_specs = []
    for pi, po in zip(_PAD_IN, _PAD_OUT):
        # Constant index_map -> weight/bias blocks are resident across steps.
        w_specs.append(pl.BlockSpec((pi, po), lambda i: (0, 0)))
        w_specs.append(pl.BlockSpec((1, po), lambda i: (0, 0)))
    out_spec = pl.BlockSpec((batch_tile, OUT_PAD), lambda i: (i, 0))

    # Real (unpadded) work for the scheduler.
    flops = 2 * B * (latent_dim * HIDDEN + 4 * HIDDEN * HIDDEN + HIDDEN * OUT)
    weight_bytes = sum(2 * pi * po + 4 * po for pi, po in zip(_PAD_IN, _PAD_OUT))
    bytes_accessed = B * latent_dim * 4 + B * OUT * 4 + weight_bytes

    out_padded = pl.pallas_call(
        _mlp_kernel,
        out_shape=jax.ShapeDtypeStruct((B_pad, OUT_PAD), jnp.float32),
        grid_spec=pltpu.PrefetchScalarGridSpec(
            num_scalar_prefetch=0,
            grid=grid,
            in_specs=[z_spec] + w_specs,
            out_specs=out_spec,
        ),
        compiler_params=pltpu.CompilerParams(
            dimension_semantics=("parallel",),
            vmem_limit_bytes=32 * 1024 * 1024,
        ),
        cost_estimate=pl.CostEstimate(
            flops=flops, transcendentals=0, bytes_accessed=bytes_accessed),
    )(z_p, *padded_params)

    return out_padded[:B, :OUT]


def _reference_f32(z, params):
    """Pure f32 reference of the PyTorch module."""
    h = z.astype(jnp.float32)
    for i, (w, b) in enumerate(params):
        h = h @ w + b
        if i < 5:
            h = jnp.where(h > 0, h, 0.2 * h)
    return h


def _reference_bf16(z, params):
    """Reference mirroring the kernel's precision (bf16 dot inputs, f32 acc)."""
    h = z.astype(jnp.float32)
    for i, (w, b) in enumerate(params):
        h = jnp.dot(h.astype(jnp.bfloat16), w.astype(jnp.bfloat16),
                    preferred_element_type=jnp.float32) + b
        if i < 5:
            h = jnp.where(h > 0, h, 0.2 * h)
    return h


if __name__ == "__main__":
    key = jax.random.PRNGKey(0)
    kp, kz1, kz2 = jax.random.split(key, 3)

    params = init_params(kp)
    padded_params = prepare_params(params)

    # Small-batch check.
    batch = 4
    z = jax.random.normal(kz1, (batch, LATENT_DIM), dtype=jnp.float32)
    out = jax.block_until_ready(factorvae_discriminator_forward(z, padded_params))
    assert out.shape == (batch, OUT), out.shape
    ref_bf16 = _reference_bf16(z, params)
    ref_f32 = _reference_f32(z, params)
    assert jnp.allclose(out, ref_bf16, atol=2e-3, rtol=2e-3), (out, ref_bf16)
    assert jnp.allclose(out, ref_f32, atol=5e-2, rtol=5e-2), (out, ref_f32)

    # Larger batch exercises the 256-row tile + batch padding path.
    batch2 = 300
    z2 = jax.random.normal(kz2, (batch2, LATENT_DIM), dtype=jnp.float32)
    out2 = jax.block_until_ready(
        factorvae_discriminator_forward(z2, padded_params))
    assert out2.shape == (batch2, OUT), out2.shape
    ref2 = _reference_bf16(z2, params)
    assert jnp.allclose(out2, ref2, atol=2e-3, rtol=2e-3), (out2, ref2)

    print("KERNEL_OK")
</pallas_src>

<mosaic_0001>
module attributes {stable_mosaic.version = 11 : i64} {
  func.func @_mlp_kernel(%arg0: i32, %arg1: memref<8x128xf32, #tpu.memory_space<vmem>>, %arg2: memref<128x512xbf16, #tpu.memory_space<vmem>>, %arg3: memref<1x512xf32, #tpu.memory_space<vmem>>, %arg4: memref<512x512xbf16, #tpu.memory_space<vmem>>, %arg5: memref<1x512xf32, #tpu.memory_space<vmem>>, %arg6: memref<512x512xbf16, #tpu.memory_space<vmem>>, %arg7: memref<1x512xf32, #tpu.memory_space<vmem>>, %arg8: memref<512x512xbf16, #tpu.memory_space<vmem>>, %arg9: memref<1x512xf32, #tpu.memory_space<vmem>>, %arg10: memref<512x512xbf16, #tpu.memory_space<vmem>>, %arg11: memref<1x512xf32, #tpu.memory_space<vmem>>, %arg12: memref<512x128xbf16, #tpu.memory_space<vmem>>, %arg13: memref<1x128xf32, #tpu.memory_space<vmem>>, %arg14: memref<8x128xf32, #tpu.memory_space<vmem>>) attributes {dimension_semantics = [#tpu.dimension_semantics<parallel>], iteration_bounds = array<i64: 1>, scalar_prefetch = 0 : i64, scratch_operands = 0 : i64, tpu.core_type = #tpu.core_type<tc>, window_params = [{transform_indices = @transform_0, window_bounds = array<i64: 8, 128>}, {pipeline_mode = #tpu.pipeline_mode<synchronous>, transform_indices = @transform_1, window_bounds = array<i64: 128, 512>}, {pipeline_mode = #tpu.pipeline_mode<synchronous>, transform_indices = @transform_2, window_bounds = array<i64: 1, 512>}, {pipeline_mode = #tpu.pipeline_mode<synchronous>, transform_indices = @transform_3, window_bounds = array<i64: 512, 512>}, {pipeline_mode = #tpu.pipeline_mode<synchronous>, transform_indices = @transform_4, window_bounds = array<i64: 1, 512>}, {pipeline_mode = #tpu.pipeline_mode<synchronous>, transform_indices = @transform_5, window_bounds = array<i64: 512, 512>}, {pipeline_mode = #tpu.pipeline_mode<synchronous>, transform_indices = @transform_6, window_bounds = array<i64: 1, 512>}, {pipeline_mode = #tpu.pipeline_mode<synchronous>, transform_indices = @transform_7, window_bounds = array<i64: 512, 512>}, {pipeline_mode = #tpu.pipeline_mode<synchronous>, transform_indices = @transform_8, window_bounds = array<i64: 1, 512>}, {pipeline_mode = #tpu.pipeline_mode<synchronous>, transform_indices = @transform_9, window_bounds = array<i64: 512, 512>}, {pipeline_mode = #tpu.pipeline_mode<synchronous>, transform_indices = @transform_10, window_bounds = array<i64: 1, 512>}, {pipeline_mode = #tpu.pipeline_mode<synchronous>, transform_indices = @transform_11, window_bounds = array<i64: 512, 128>}, {pipeline_mode = #tpu.pipeline_mode<synchronous>, transform_indices = @transform_12, window_bounds = array<i64: 1, 128>}, {transform_indices = @transform_13, window_bounds = array<i64: 8, 128>}]} {
    %c0 = arith.constant 0 : index
    %c0_0 = arith.constant 0 : index
    %0 = vector.load %arg1[%c0, %c0_0] : memref<8x128xf32, #tpu.memory_space<vmem>>, vector<8x128xf32>
    %c0_1 = arith.constant 0 : index
    %c0_2 = arith.constant 0 : index
    %1 = vector.load %arg2[%c0_1, %c0_2] : memref<128x512xbf16, #tpu.memory_space<vmem>>, vector<128x512xbf16>
    %c0_3 = arith.constant 0 : index
    %c0_4 = arith.constant 0 : index
    %2 = vector.load %arg3[%c0_3, %c0_4] : memref<1x512xf32, #tpu.memory_space<vmem>>, vector<1x512xf32>
    %3 = arith.truncf %0 : vector<8x128xf32> to vector<8x128xbf16>
    %cst = arith.constant dense<0.000000e+00> : vector<8x512xf32>
    %4 = tpu.matmul %3, %1, %cst {dimension_numbers = #tpu.dot_dimension_numbers<[1], [0], [0], [1], [0, 0, 1, 1], [], []>} : vector<8x128xbf16>, vector<128x512xbf16>, vector<8x512xf32> -> vector<8x512xf32>
    %5 = vector.broadcast %2 : vector<1x512xf32> to vector<8x512xf32>
    %6 = arith.addf %4, %5 : vector<8x512xf32>
    %cst_5 = arith.constant 0.000000e+00 : f32
    %7 = vector.broadcast %cst_5 : f32 to vector<8x512xf32>
    %8 = arith.cmpf ogt, %6, %7 : vector<8x512xf32>
    %cst_6 = arith.constant 2.000000e-01 : f32
    %9 = vector.broadcast %cst_6 : f32 to vector<8x512xf32>
    %10 = arith.mulf %9, %6 : vector<8x512xf32>
    %11 = arith.select %8, %6, %10 : vector<8x512xi1>, vector<8x512xf32>
    %c0_7 = arith.constant 0 : index
    %c0_8 = arith.constant 0 : index
    %12 = vector.load %arg4[%c0_7, %c0_8] : memref<512x512xbf16, #tpu.memory_space<vmem>>, vector<512x512xbf16>
    %c0_9 = arith.constant 0 : index
    %c0_10 = arith.constant 0 : index
    %13 = vector.load %arg5[%c0_9, %c0_10] : memref<1x512xf32, #tpu.memory_space<vmem>>, vector<1x512xf32>
    %14 = arith.truncf %11 : vector<8x512xf32> to vector<8x512xbf16>
    %cst_11 = arith.constant dense<0.000000e+00> : vector<8x512xf32>
    %15 = tpu.matmul %14, %12, %cst_11 {dimension_numbers = #tpu.dot_dimension_numbers<[1], [0], [0], [1], [0, 0, 1, 1], [], []>} : vector<8x512xbf16>, vector<512x512xbf16>, vector<8x512xf32> -> vector<8x512xf32>
    %16 = vector.broadcast %13 : vector<1x512xf32> to vector<8x512xf32>
    %17 = arith.addf %15, %16 : vector<8x512xf32>
    %cst_12 = arith.constant 0.000000e+00 : f32
    %18 = vector.broadcast %cst_12 : f32 to vector<8x512xf32>
    %19 = arith.cmpf ogt, %17, %18 : vector<8x512xf32>
    %cst_13 = arith.constant 2.000000e-01 : f32
    %20 = vector.broadcast %cst_13 : f32 to vector<8x512xf32>
    %21 = arith.mulf %20, %17 : vector<8x512xf32>
    %22 = arith.select %19, %17, %21 : vector<8x512xi1>, vector<8x512xf32>
    %c0_14 = arith.constant 0 : index
    %c0_15 = arith.constant 0 : index
    %23 = vector.load %arg6[%c0_14, %c0_15] : memref<512x512xbf16, #tpu.memory_space<vmem>>, vector<512x512xbf16>
    %c0_16 = arith.constant 0 : index
    %c0_17 = arith.constant 0 : index
    %24 = vector.load %arg7[%c0_16, %c0_17] : memref<1x512xf32, #tpu.memory_space<vmem>>, vector<1x512xf32>
    %25 = arith.truncf %22 : vector<8x512xf32> to vector<8x512xbf16>
    %cst_18 = arith.constant dense<0.000000e+00> : vector<8x512xf32>
    %26 = tpu.matmul %25, %23, %cst_18 {dimension_numbers = #tpu.dot_dimension_numbers<[1], [0], [0], [1], [0, 0, 1, 1], [], []>} : vector<8x512xbf16>, vector<512x512xbf16>, vector<8x512xf32> -> vector<8x512xf32>
    %27 = vector.broadcast %24 : vector<1x512xf32> to vector<8x512xf32>
    %28 = arith.addf %26, %27 : vector<8x512xf32>
    %cst_19 = arith.constant 0.000000e+00 : f32
    %29 = vector.broadcast %cst_19 : f32 to vector<8x512xf32>
    %30 = arith.cmpf ogt, %28, %29 : vector<8x512xf32>
    %cst_20 = arith.constant 2.000000e-01 : f32
    %31 = vector.broadcast %cst_20 : f32 to vector<8x512xf32>
    %32 = arith.mulf %31, %28 : vector<8x512xf32>
    %33 = arith.select %30, %28, %32 : vector<8x512xi1>, vector<8x512xf32>
    %c0_21 = arith.constant 0 : index
    %c0_22 = arith.constant 0 : index
    %34 = vector.load %arg8[%c0_21, %c0_22] : memref<512x512xbf16, #tpu.memory_space<vmem>>, vector<512x512xbf16>
    %c0_23 = arith.constant 0 : index
    %c0_24 = arith.constant 0 : index
    %35 = vector.load %arg9[%c0_23, %c0_24] : memref<1x512xf32, #tpu.memory_space<vmem>>, vector<1x512xf32>
    %36 = arith.truncf %33 : vector<8x512xf32> to vector<8x512xbf16>
    %cst_25 = arith.constant dense<0.000000e+00> : vector<8x512xf32>
    %37 = tpu.matmul %36, %34, %cst_25 {dimension_numbers = #tpu.dot_dimension_numbers<[1], [0], [0], [1], [0, 0, 1, 1], [], []>} : vector<8x512xbf16>, vector<512x512xbf16>, vector<8x512xf32> -> vector<8x512xf32>
    %38 = vector.broadcast %35 : vector<1x512xf32> to vector<8x512xf32>
    %39 = arith.addf %37, %38 : vector<8x512xf32>
    %cst_26 = arith.constant 0.000000e+00 : f32
    %40 = vector.broadcast %cst_26 : f32 to vector<8x512xf32>
    %41 = arith.cmpf ogt, %39, %40 : vector<8x512xf32>
    %cst_27 = arith.constant 2.000000e-01 : f32
    %42 = vector.broadcast %cst_27 : f32 to vector<8x512xf32>
    %43 = arith.mulf %42, %39 : vector<8x512xf32>
    %44 = arith.select %41, %39, %43 : vector<8x512xi1>, vector<8x512xf32>
    %c0_28 = arith.constant 0 : index
    %c0_29 = arith.constant 0 : index
    %45 = vector.load %arg10[%c0_28, %c0_29] : memref<512x512xbf16, #tpu.memory_space<vmem>>, vector<512x512xbf16>
    %c0_30 = arith.constant 0 : index
    %c0_31 = arith.constant 0 : index
    %46 = vector.load %arg11[%c0_30, %c0_31] : memref<1x512xf32, #tpu.memory_space<vmem>>, vector<1x512xf32>
    %47 = arith.truncf %44 : vector<8x512xf32> to vector<8x512xbf16>
    %cst_32 = arith.constant dense<0.000000e+00> : vector<8x512xf32>
    %48 = tpu.matmul %47, %45, %cst_32 {dimension_numbers = #tpu.dot_dimension_numbers<[1], [0], [0], [1], [0, 0, 1, 1], [], []>} : vector<8x512xbf16>, vector<512x512xbf16>, vector<8x512xf32> -> vector<8x512xf32>
    %49 = vector.broadcast %46 : vector<1x512xf32> to vector<8x512xf32>
    %50 = arith.addf %48, %49 : vector<8x512xf32>
    %cst_33 = arith.constant 0.000000e+00 : f32
    %51 = vector.broadcast %cst_33 : f32 to vector<8x512xf32>
    %52 = arith.cmpf ogt, %50, %51 : vector<8x512xf32>
    %cst_34 = arith.constant 2.000000e-01 : f32
    %53 = vector.broadcast %cst_34 : f32 to vector<8x512xf32>
    %54 = arith.mulf %53, %50 : vector<8x512xf32>
    %55 = arith.select %52, %50, %54 : vector<8x512xi1>, vector<8x512xf32>
    %c0_35 = arith.constant 0 : index
    %c0_36 = arith.constant 0 : index
    %56 = vector.load %arg12[%c0_35, %c0_36] : memref<512x128xbf16, #tpu.memory_space<vmem>>, vector<512x128xbf16>
    %c0_37 = arith.constant 0 : index
    %c0_38 = arith.constant 0 : index
    %57 = vector.load %arg13[%c0_37, %c0_38] : memref<1x128xf32, #tpu.memory_space<vmem>>, vector<1x128xf32>
    %58 = arith.truncf %55 : vector<8x512xf32> to vector<8x512xbf16>
    %cst_39 = arith.constant dense<0.000000e+00> : vector<8x128xf32>
    %59 = tpu.matmul %58, %56, %cst_39 {dimension_numbers = #tpu.dot_dimension_numbers<[1], [0], [0], [1], [0, 0, 1, 1], [], []>} : vector<8x512xbf16>, vector<512x128xbf16>, vector<8x128xf32> -> vector<8x128xf32>
    %60 = vector.broadcast %57 : vector<1x128xf32> to vector<8x128xf32>
    %61 = arith.addf %59, %60 : vector<8x128xf32>
    %c0_40 = arith.constant 0 : index
    %c0_41 = arith.constant 0 : index
    %62 = vector.load %arg14[%c0_40, %c0_41] : memref<8x128xf32, #tpu.memory_space<vmem>>, vector<8x128xf32>
    tpu.vector_store %arg14[%c0_40, %c0_41], %61 {strides = array<i32>} : memref<8x128xf32, #tpu.memory_space<vmem>>, vector<8x128xf32>,
    return
  }
  func.func @transform_0(%arg0: i32) -> (i32, i32) {
    %c0_i32 = arith.constant 0 : i32
    %c0_i32_0 = arith.constant 0 : i32
    return %arg0, %c0_i32 : i32, i32
  }
  func.func @transform_1(%arg0: i32) -> (i32, i32) {
    %c0_i32 = arith.constant 0 : i32
    %c0_i32_0 = arith.constant 0 : i32
    %c0_i32_1 = arith.constant 0 : i32
    return %c0_i32, %c0_i32_0 : i32, i32
  }
  func.func @transform_2(%arg0: i32) -> (i32, i32) {
    %c0_i32 = arith.constant 0 : i32
    %c0_i32_0 = arith.constant 0 : i32
    %c0_i32_1 = arith.constant 0 : i32
    return %c0_i32, %c0_i32_0 : i32, i32
  }
  func.func @transform_3(%arg0: i32) -> (i32, i32) {
    %c0_i32 = arith.constant 0 : i32
    %c0_i32_0 = arith.constant 0 : i32
    %c0_i32_1 = arith.constant 0 : i32
    return %c0_i32, %c0_i32_0 : i32, i32
  }
  func.func @transform_4(%arg0: i32) -> (i32, i32) {
    %c0_i32 = arith.constant 0 : i32
    %c0_i32_0 = arith.constant 0 : i32
    %c0_i32_1 = arith.constant 0 : i32
    return %c0_i32, %c0_i32_0 : i32, i32
  }
  func.func @transform_5(%arg0: i32) -> (i32, i32) {
    %c0_i32 = arith.constant 0 : i32
    %c0_i32_0 = arith.constant 0 : i32
    %c0_i32_1 = arith.constant 0 : i32
    return %c0_i32, %c0_i32_0 : i32, i32
  }
  func.func @transform_6(%arg0: i32) -> (i32, i32) {
    %c0_i32 = arith.constant 0 : i32
    %c0_i32_0 = arith.constant 0 : i32
    %c0_i32_1 = arith.constant 0 : i32
    return %c0_i32, %c0_i32_0 : i32, i32
  }
  func.func @transform_7(%arg0: i32) -> (i32, i32) {
    %c0_i32 = arith.constant 0 : i32
    %c0_i32_0 = arith.constant 0 : i32
    %c0_i32_1 = arith.constant 0 : i32
    return %c0_i32, %c0_i32_0 : i32, i32
  }
  func.func @transform_8(%arg0: i32) -> (i32, i32) {
    %c0_i32 = arith.constant 0 : i32
    %c0_i32_0 = arith.constant 0 : i32
    %c0_i32_1 = arith.constant 0 : i32
    return %c0_i32, %c0_i32_0 : i32, i32
  }
  func.func @transform_9(%arg0: i32) -> (i32, i32) {
    %c0_i32 = arith.constant 0 : i32
    %c0_i32_0 = arith.constant 0 : i32
    %c0_i32_1 = arith.constant 0 : i32
    return %c0_i32, %c0_i32_0 : i32, i32
  }
  func.func @transform_10(%arg0: i32) -> (i32, i32) {
    %c0_i32 = arith.constant 0 : i32
    %c0_i32_0 = arith.constant 0 : i32
    %c0_i32_1 = arith.constant 0 : i32
    return %c0_i32, %c0_i32_0 : i32, i32
  }
  func.func @transform_11(%arg0: i32) -> (i32, i32) {
    %c0_i32 = arith.constant 0 : i32
    %c0_i32_0 = arith.constant 0 : i32
    %c0_i32_1 = arith.constant 0 : i32
    return %c0_i32, %c0_i32_0 : i32, i32
  }
  func.func @transform_12(%arg0: i32) -> (i32, i32) {
    %c0_i32 = arith.constant 0 : i32
    %c0_i32_0 = arith.constant 0 : i32
    %c0_i32_1 = arith.constant 0 : i32
    return %c0_i32, %c0_i32_0 : i32, i32
  }
  func.func @transform_13(%arg0: i32) -> (i32, i32) {
    %c0_i32 = arith.constant 0 : i32
    %c0_i32_0 = arith.constant 0 : i32
    return %arg0, %c0_i32 : i32, i32
  }
}

</mosaic_0001>

<bundles_post_ra>
// kernel: factorvae_discriminator_forward.1
= control target key start
LH: loop header
LB: loop body
LE: loop exit
PB: predicated region body
PF: predicated region fallthrough
CT: control target
= control target key end

     0   :  { %18 = vsyncpa [#allocation3], 0  ;;  %s6509_s0 = inlined_call_operand.vmem [shape: f32[8,128], index: 0, kind: input, shape index: {}]   ;;  %s6510_s1 = inlined_call_operand.hbm [shape: bf16[128,512], index: 1, kind: input, shape index: {}]   ;;  %s6511_s2 = inlined_call_operand.vmem [shape: f32[1,512], index: 2, kind: input, shape index: {}]   ;;  %s6512_s3 = inlined_call_operand.hbm [shape: bf16[512,512], index: 3, kind: input, shape index: {}]   ;;  %s6513_s4 = inlined_call_operand.vmem [shape: f32[1,512], index: 4, kind: input, shape index: {}]   ;;  %s6514_s5 = inlined_call_operand.hbm [shape: bf16[512,512], index: 5, kind: input, shape index: {}]   ;;  %s6515_s6 = inlined_call_operand.vmem [shape: f32[1,512], index: 6, kind: input, shape index: {}]   ;;  %s6516_s7 = inlined_call_operand.hbm [shape: bf16[512,512], index: 7, kind: input, shape index: {}]   ;;  %s6517_s8 = inlined_call_operand.vmem [shape: f32[1,512], index: 8, kind: input, shape index: {}]   ;;  %s6518_s9 = inlined_call_operand.hbm [shape: bf16[512,512], index: 9, kind: input, shape index: {}]   ;;  %s6519_s10 = inlined_call_operand.vmem [shape: f32[1,512], index: 10, kind: input, shape index: {}]   ;;  %s6520_s11 = inlined_call_operand.hbm [shape: bf16[512,128], index: 11, kind: input, shape index: {}]   ;;  %s6521_s12 = inlined_call_operand.vmem [shape: f32[1,128], index: 12, kind: input, shape index: {}]   ;;  %s6522_s13 = inlined_call_operand.vmem [shape: f32[8,128], index: 13, kind: output, shape index: {}]  }
   0x1   :  { %19 = vsyncpa [#allocation5], 0 }
   0x2   :  { %20 = vsyncpa [#allocation8], 0 }
   0x3   :  { %21 = vsyncpa [#allocation11], 0  ;;  %s6281_s25 = smov [#allocation4]   ;;  %s6282_s27 = smov [#allocation7]  }
   0x4   :  { %s43_s26 = sshll.u32 %s6281_s25, 4  ;;  %s71_s28 = sshll.u32 %s6282_s27, 4  ;;  %s44_s26 = int_to_ptr.vmem [resolvable:$true] %s43_s26  ;;  %s72_s28 = int_to_ptr.vmem [resolvable:$true] %s71_s28 }
   0x5   :  { %s6161_s29 = scalar_lea.vmem %s44_s26, 16384  ;;  %p6166_p1 = scmp.lt.s32.totalorder %s44_s26, %s44_s26 }
   0x6   :  { %p6162_p0 = scmp.ne.s32.totalorder %s44_s26, %s6161_s29  ;;  %p6167_p2 = scmp.lt.s32.totalorder %s6161_s29, %s6161_s29 }
   0x8   :  { %p6168_p3 = por %p6167_p2, %p6166_p1 }
   0xa   :  { %p6169_p4 = pnand %p6168_p3, %p6162_p0 }
   0xc   :  { %6172 = shalt.err (!%p6169_p4)
}
   0xd   :  { %s6283_s30 = smov 256   ;;  %s6284_s14 = smov 16  }
   0xe   :  { %49 = dma.hbm_to_vmem [thread:$0]  %s6512_s3, 16384, %s44_s26, [#allocation5], %s6283_s30, %s6283_s30, %s6284_s14  }
   0xf   :  { %s6181_s17 = scalar_lea.vmem %s72_s28, 16384  ;;  %p6186_p6 = scmp.lt.s32.totalorder %s72_s28, %s72_s28 }
  0x10   :  { %p6182_p5 = scmp.ne.s32.totalorder %s72_s28, %s6181_s17  ;;  %p6187_p7 = scmp.lt.s32.totalorder %s6181_s17, %s6181_s17 }
  0x12   :  { %p6188_p8 = por %p6187_p7, %p6186_p6 }
  0x14   :  { %p6189_p9 = pnand %p6188_p8, %p6182_p5 }
  0x16   :  { %6192 = shalt.err (!%p6189_p9)
}
  0x17   :  { %77 = dma.hbm_to_vmem [thread:$0]  %s6516_s7, 16384, %s72_s28, [#allocation8], %s6283_s30, %s6283_s30, %s6284_s14  }
  0x18   :  { %s6285_s20 = smov [#allocation2]   ;;  %s6286_s22 = smov [#allocation6]  }
  0x19   :  { %s29_s21 = sshll.u32 %s6285_s20, 4  ;;  %s57_s23 = sshll.u32 %s6286_s22, 4  ;;  %s30_s21 = int_to_ptr.vmem [resolvable:$true] %s29_s21  ;;  %s58_s23 = int_to_ptr.vmem [resolvable:$true] %s57_s23 }
  0x1a   :  { %s6201_s3 = scalar_lea.vmem %s30_s21, 4096  ;;  %p6206_p11 = scmp.lt.s32.totalorder %s30_s21, %s30_s21 }
  0x1b   :  { %p6202_p10 = scmp.ne.s32.totalorder %s30_s21, %s6201_s3  ;;  %p6207_p12 = scmp.lt.s32.totalorder %s6201_s3, %s6201_s3 }
  0x1d   :  { %p6208_p13 = por %p6207_p12, %p6206_p11 }
  0x1f   :  { %p6209_p0 = pnand %p6208_p13, %p6202_p10 }
  0x21   :  { %6212 = shalt.err (!%p6209_p0)
}
  0x22   :  { %35 = dma.hbm_to_vmem [thread:$0]  %s6510_s1, 4096, %s30_s21, [#allocation3], %s6283_s30, %s6283_s30, %s6284_s14  }
  0x23   :  { %s6221_s7 = scalar_lea.vmem %s58_s23, 16384  ;;  %p6226_p2 = scmp.lt.s32.totalorder %s58_s23, %s58_s23 }
  0x24   :  { %p6222_p1 = scmp.ne.s32.totalorder %s58_s23, %s6221_s7  ;;  %p6227_p3 = scmp.lt.s32.totalorder %s6221_s7, %s6221_s7 }
  0x26   :  { %p6228_p4 = por %p6227_p3, %p6226_p2 }
  0x28   :  { %p6229_p5 = pnand %p6228_p4, %p6222_p1 }
  0x2a   :  { %6232 = shalt.err (!%p6229_p5)
}
  0x2b   :  { %63 = dma.hbm_to_vmem [thread:$0]  %s6514_s5, 16384, %s58_s23, [#allocation5], %s6283_s30, %s6283_s30, %s6284_s14  }
  0x2c   :  { %s6287_s28 = smov [#allocation9]   ;;  %s6288_s15 = smov [#allocation10]  }
  0x2d   :  { %s85_s29 = sshll.u32 %s6287_s28, 4  ;;  %s99_s16 = sshll.u32 %s6288_s15, 4  ;;  %s86_s29 = int_to_ptr.vmem [resolvable:$true] %s85_s29  ;;  %s100_s16 = int_to_ptr.vmem [resolvable:$true] %s99_s16 }
  0x2e   :  { %s6241_s1 = scalar_lea.vmem %s86_s29, 16384  ;;  %p6246_p7 = scmp.lt.s32.totalorder %s86_s29, %s86_s29 }
  0x2f   :  { %p6242_p6 = scmp.ne.s32.totalorder %s86_s29, %s6241_s1  ;;  %p6247_p8 = scmp.lt.s32.totalorder %s6241_s1, %s6241_s1 }
  0x31   :  { %p6248_p9 = por %p6247_p8, %p6246_p7 }
  0x33   :  { %p6249_p10 = pnand %p6248_p9, %p6242_p6 }
  0x35   :  { %6252 = shalt.err (!%p6249_p10)
}
  0x36   :  { %91 = dma.hbm_to_vmem [thread:$0]  %s6518_s9, 16384, %s86_s29, [#allocation8], %s6283_s30, %s6283_s30, %s6284_s14  }
  0x37   :  { %s6261_s5 = scalar_lea.vmem %s100_s16, 4096  ;;  %p6266_p12 = scmp.lt.s32.totalorder %s100_s16, %s100_s16 }
  0x38   :  { %p6262_p11 = scmp.ne.s32.totalorder %s100_s16, %s6261_s5  ;;  %p6267_p13 = scmp.lt.s32.totalorder %s6261_s5, %s6261_s5 }
  0x3a   :  { %p6268_p0 = por %p6267_p13, %p6266_p12 }
  0x3c   :  { %p6269_p1 = pnand %p6268_p0, %p6262_p11 }
  0x3e   :  { %6272 = shalt.err (!%p6269_p1)
}
  0x3f   :  { %s6289_s19 = smov 64   ;;  %s6290_s20 = smov 4  }
  0x40   :  { %105 = dma.hbm_to_vmem [thread:$0]  %s6520_s11, 4096, %s100_s16, [#allocation11], %s6289_s19, %s6289_s19, %s6290_s20  }
  0x41   :  { %6273 = dma.done.wait [#allocation3], 4096  }
  0x42   :  { %6274 = vsyncadd [#allocation3], 4294963200 }
  0x43   :  { %6275 = dma.done.wait [#allocation5], 32768  }
  0x44   :  { %6276 = vsyncadd [#allocation5], 4294934528 }
  0x45   :  { %6277 = dma.done.wait [#allocation8], 32768  }
  0x46   :  { %6278 = vsyncadd [#allocation8], 4294934528 }
  0x47   :  { %6279 = dma.done.wait [#allocation11], 4096  }
  0x48   :  { %6280 = vsyncadd [#allocation11], 4294963200  ;;  %v6291_v0 = vmov 0   ;;  %v5305_v1 = vld [vmem:[#allocation2 + $0xe4] ss:$16 sps:$4 sm:$0xff]  }
  0x49   :  { %375 = vmatprep.mubr.bf16.mxu0 %v6291_v0  ;;  %416 = vmatprep.mubr.bf16.mxu1 %v6291_v0  ;;  %v5307_v2 = vld [vmem:[#allocation2 + $0xec] ss:$16 sps:$4 sm:$0xff]   ;;  %v5309_v3 = vld [vmem:[#allocation2 + $0xe0] ss:$16 sps:$4 sm:$0xff]   ;;  %v5310_v4 = vld [vmem:[#allocation2 + $0xe8] ss:$16 sps:$4 sm:$0xff]  }
  0x4a   :  { %343 = vmatprep.subr.bf16.mxu0 %v5305_v1  ;;  %384 = vmatprep.subr.bf16.mxu1 %v5307_v2  ;;  %v5311_v5 = vld [vmem:[#allocation2 + $0xc4] ss:$16 sps:$4 sm:$0xff]   ;;  %v5313_v6 = vld [vmem:[#allocation2 + $0xcc] ss:$16 sps:$4 sm:$0xff]   ;;  %v5315_v7 = vld [vmem:[#allocation2 + $0xc0] ss:$16 sps:$4 sm:$0xff]  }
  0x4b   :  { %344 = vmatpush1.bf16.msra.mxu0 %v5309_v3  ;;  %385 = vmatpush1.bf16.msra.mxu1 %v5310_v4  ;;  %v5316_v8 = vld [vmem:[#allocation2 + $0xc8] ss:$16 sps:$4 sm:$0xff]   ;;  %v5317_v9 = vld [vmem:[#allocation2 + $0xa4] ss:$16 sps:$4 sm:$0xff]   ;;  %v5319_v10 = vld [vmem:[#allocation2 + $0xac] ss:$16 sps:$4 sm:$0xff]  }
  0x4c   :  { %345 = vmatprep.subr.bf16.mxu0 %v5311_v5  ;;  %386 = vmatprep.subr.bf16.mxu1 %v5313_v6  ;;  %v5321_v11 = vld [vmem:[#allocation2 + $0xa0] ss:$16 sps:$4 sm:$0xff]   ;;  %v5322_v12 = vld [vmem:[#allocation2 + $0xa8] ss:$16 sps:$4 sm:$0xff]   ;;  %v5323_v13 = vld [vmem:[#allocation2 + $0x84] ss:$16 sps:$4 sm:$0xff]  }
  0x4d   :  { %v5325_v14 = vld [vmem:[#allocation2 + $0x8c] ss:$16 sps:$4 sm:$0xff]   ;;  %v5327_v15 = vld [vmem:[#allocation2 + $0x80] ss:$16 sps:$4 sm:$0xff]   ;;  %v5328_v16 = vld [vmem:[#allocation2 + $0x88] ss:$16 sps:$4 sm:$0xff]  }
  0x4e   :  { %v5329_v17 = vld [vmem:[#allocation2 + $0x64] ss:$16 sps:$4 sm:$0xff]   ;;  %v5331_v18 = vld [vmem:[#allocation2 + $0x6c] ss:$16 sps:$4 sm:$0xff]   ;;  %v5333_v19 = vld [vmem:[#allocation2 + $0x60] ss:$16 sps:$4 sm:$0xff]  }
  0x4f   :  { %346 = vmatpush1.bf16.msra.mxu0 %v5315_v7  ;;  %387 = vmatpush1.bf16.msra.mxu1 %v5316_v8  ;;  %v5334_v20 = vld [vmem:[#allocation2 + $0x68] ss:$16 sps:$4 sm:$0xff]   ;;  %v5335_v21 = vld [vmem:[#allocation2 + $0x44] ss:$16 sps:$4 sm:$0xff]   ;;  %v5337_v22 = vld [vmem:[#allocation2 + $0x4c] ss:$16 sps:$4 sm:$0xff]  }
  0x50   :  { %347 = vmatprep.subr.bf16.mxu0 %v5317_v9  ;;  %388 = vmatprep.subr.bf16.mxu1 %v5319_v10  ;;  %v5339_v23 = vld [vmem:[#allocation2 + $0x40] ss:$16 sps:$4 sm:$0xff]   ;;  %v5340_v24 = vld [vmem:[#allocation2 + $0x48] ss:$16 sps:$4 sm:$0xff]   ;;  %v5341_v25 = vld [vmem:[#allocation2 + $0x24] ss:$16 sps:$4 sm:$0xff]  }
  0x51   :  { %v5343_v26 = vld [vmem:[#allocation2 + $0x2c] ss:$16 sps:$4 sm:$0xff]   ;;  %v5345_v27 = vld [vmem:[#allocation2 + $0x20] ss:$16 sps:$4 sm:$0xff]   ;;  %v5346_v28 = vld [vmem:[#allocation2 + $0x28] ss:$16 sps:$4 sm:$0xff]  }
  0x52   :  { %v5347_v29 = vld [vmem:[#allocation2 + $0x4] ss:$16 sps:$4 sm:$0xff]   ;;  %v5349_v30 = vld [vmem:[#allocation2 + $0xc] ss:$16 sps:$4 sm:$0xff]   ;;  %v5351_v31 = vld [vmem:[#allocation2] ss:$16 sps:$4 sm:$0xff]  }
  0x53   :  { %348 = vmatpush1.bf16.msra.mxu0 %v5321_v11  ;;  %389 = vmatpush1.bf16.msra.mxu1 %v5322_v12  ;;  %v5352_v32 = vld [vmem:[#allocation2 + $0x8] ss:$16 sps:$4 sm:$0xff]   ;;  %v127_v33 = vld [vmem:[%s6509_s0] sm:$0xff] }
  0x54   :  { %349 = vmatprep.subr.bf16.mxu0 %v5323_v13  ;;  %390 = vmatprep.subr.bf16.mxu1 %v5325_v14  ;;  %v5355_v34 = vld [vmem:[#allocation4 + $0xe4] ss:$16 sps:$4 sm:$0xff]   ;;  %v161_v36 = vpack.c.bf16 %v127_v33, %v127_v33  ;;  %v5353_v37 = vld [vmem:[#allocation4 + $0xe0] ss:$16 sps:$4 sm:$0xff]  }
  0x55   :  { %v5358_v35 = vld [vmem:[#allocation4 + $0x2e4] ss:$16 sps:$4 sm:$0xff]   ;;  %v5356_v38 = vld [vmem:[#allocation4 + $0x2e0] ss:$16 sps:$4 sm:$0xff]  }
  0x56   :  { %v5361_v39 = vld [vmem:[#allocation4 + $0xc4] ss:$16 sps:$4 sm:$0xff]   ;;  %v5359_v41 = vld [vmem:[#allocation4 + $0xc0] ss:$16 sps:$4 sm:$0xff]  }
  0x57   :  { %350 = vmatpush1.bf16.msra.mxu0 %v5327_v15  ;;  %391 = vmatpush1.bf16.msra.mxu1 %v5328_v16  ;;  %v5364_v40 = vld [vmem:[#allocation4 + $0x2c4] ss:$16 sps:$4 sm:$0xff]   ;;  %v5362_v42 = vld [vmem:[#allocation4 + $0x2c0] ss:$16 sps:$4 sm:$0xff]  }
  0x58   :  { %351 = vmatprep.subr.bf16.mxu0 %v5329_v17  ;;  %392 = vmatprep.subr.bf16.mxu1 %v5331_v18  ;;  %v5367_v43 = vld [vmem:[#allocation4 + $0xa4] ss:$16 sps:$4 sm:$0xff]   ;;  %v5365_v45 = vld [vmem:[#allocation4 + $0xa0] ss:$16 sps:$4 sm:$0xff]  }
  0x59   :  { %v5370_v44 = vld [vmem:[#allocation4 + $0x2a4] ss:$16 sps:$4 sm:$0xff]   ;;  %v5368_v46 = vld [vmem:[#allocation4 + $0x2a0] ss:$16 sps:$4 sm:$0xff]  }
  0x5a   :  { %v5373_v47 = vld [vmem:[#allocation4 + $0x84] ss:$16 sps:$4 sm:$0xff]   ;;  %v5371_v49 = vld [vmem:[#allocation4 + $0x80] ss:$16 sps:$4 sm:$0xff]  }
  0x5b   :  { %352 = vmatpush1.bf16.msra.mxu0 %v5333_v19  ;;  %393 = vmatpush1.bf16.msra.mxu1 %v5334_v20  ;;  %v5376_v48 = vld [vmem:[#allocation4 + $0x284] ss:$16 sps:$4 sm:$0xff]   ;;  %v5374_v50 = vld [vmem:[#allocation4 + $0x280] ss:$16 sps:$4 sm:$0xff]  }
  0x5c   :  { %353 = vmatprep.subr.bf16.mxu0 %v5335_v21  ;;  %394 = vmatprep.subr.bf16.mxu1 %v5337_v22  ;;  %v5379_v51 = vld [vmem:[#allocation4 + $0x64] ss:$16 sps:$4 sm:$0xff]   ;;  %v5377_v53 = vld [vmem:[#allocation4 + $0x60] ss:$16 sps:$4 sm:$0xff]  }
  0x5d   :  { %v5382_v52 = vld [vmem:[#allocation4 + $0x264] ss:$16 sps:$4 sm:$0xff]   ;;  %v5380_v54 = vld [vmem:[#allocation4 + $0x260] ss:$16 sps:$4 sm:$0xff]  }
  0x5e   :  { %v5385_v55 = vld [vmem:[#allocation4 + $0x44] ss:$16 sps:$4 sm:$0xff]   ;;  %v5383_v57 = vld [vmem:[#allocation4 + $0x40] ss:$16 sps:$4 sm:$0xff]  }
  0x5f   :  { %354 = vmatpush1.bf16.msra.mxu0 %v5339_v23  ;;  %395 = vmatpush1.bf16.msra.mxu1 %v5340_v24  ;;  %v5388_v56 = vld [vmem:[#allocation4 + $0x244] ss:$16 sps:$4 sm:$0xff]   ;;  %v5386_v58 = vld [vmem:[#allocation4 + $0x240] ss:$16 sps:$4 sm:$0xff]  }
  0x60   :  { %355 = vmatprep.subr.bf16.mxu0 %v5341_v25  ;;  %396 = vmatprep.subr.bf16.mxu1 %v5343_v26  ;;  %v5391_v59 = vld [vmem:[#allocation4 + $0x24] ss:$16 sps:$4 sm:$0xff]   ;;  %v5389_v61 = vld [vmem:[#allocation4 + $0x20] ss:$16 sps:$4 sm:$0xff]  }
  0x61   :  { %v5394_v60 = vld [vmem:[#allocation4 + $0x224] ss:$16 sps:$4 sm:$0xff]   ;;  %v5392_v62 = vld [vmem:[#allocation4 + $0x220] ss:$16 sps:$4 sm:$0xff]  }
  0x62   :  { %v5397_v63 = vld [vmem:[#allocation4 + $0x4] ss:$16 sps:$4 sm:$0xff]   ;;  %v5395_v1 = vld [vmem:[#allocation4] ss:$16 sps:$4 sm:$0xff]  }
  0x63   :  { %356 = vmatpush1.bf16.msra.mxu0 %v5345_v27  ;;  %397 = vmatpush1.bf16.msra.mxu1 %v5346_v28  ;;  %v5400_v0 = vld [vmem:[#allocation4 + $0x204] ss:$16 sps:$4 sm:$0xff]   ;;  %v5398_v2 = vld [vmem:[#allocation4 + $0x200] ss:$16 sps:$4 sm:$0xff]  }
  0x64   :  { %357 = vmatprep.subr.bf16.mxu0 %v5347_v29  ;;  %398 = vmatprep.subr.bf16.mxu1 %v5349_v30  ;;  %v5403_v3 = vld [vmem:[#allocation4 + $0x1e4] ss:$16 sps:$4 sm:$0xff]   ;;  %v5401_v5 = vld [vmem:[#allocation4 + $0x1e0] ss:$16 sps:$4 sm:$0xff]  }
  0x65   :  { %v5406_v4 = vld [vmem:[#allocation4 + $0x3e4] ss:$16 sps:$4 sm:$0xff]   ;;  %v5404_v6 = vld [vmem:[#allocation4 + $0x3e0] ss:$16 sps:$4 sm:$0xff]  }
  0x66   :  { %v5409_v7 = vld [vmem:[#allocation4 + $0x1c4] ss:$16 sps:$4 sm:$0xff]   ;;  %v5407_v9 = vld [vmem:[#allocation4 + $0x1c0] ss:$16 sps:$4 sm:$0xff]  }
  0x67   :  { %358 = vmatpush1.bf16.msra.mxu0 %v5351_v31  ;;  %399 = vmatpush1.bf16.msra.mxu1 %v5352_v32  ;;  %v5412_v8 = vld [vmem:[#allocation4 + $0x3c4] ss:$16 sps:$4 sm:$0xff]   ;;  %v5410_v10 = vld [vmem:[#allocation4 + $0x3c0] ss:$16 sps:$4 sm:$0xff]  }
  0x68   :  { %1231 = vmatprep.subr.bf16.mxu0 %v5355_v34  ;;  %1272 = vmatprep.subr.bf16.mxu1 %v5358_v35  ;;  %v5415_v11 = vld [vmem:[#allocation4 + $0x1a4] ss:$16 sps:$4 sm:$0xff]   ;;  %v5413_v13 = vld [vmem:[#allocation4 + $0x1a0] ss:$16 sps:$4 sm:$0xff]   ;;  %v5451_v35 = vld [vmem:[#allocation4 + $0xec] ss:$16 sps:$4 sm:$0xff]  }
  0x69   :  { %v5418_v12 = vld [vmem:[#allocation4 + $0x3a4] ss:$16 sps:$4 sm:$0xff]   ;;  %v5416_v14 = vld [vmem:[#allocation4 + $0x3a0] ss:$16 sps:$4 sm:$0xff]  }
  0x6a   :  { %376 = vmatmul.mubr.bf16.vlgmr.msra.gmra.mxu0 %v161_v36  ;;  %417 = vmatmul.mubr.bf16.vlgmr.msra.gmra.mxu1 %v161_v36  ;;  %v5421_v15 = vld [vmem:[#allocation4 + $0x184] ss:$16 sps:$4 sm:$0xff]   ;;  %v5419_v17 = vld [vmem:[#allocation4 + $0x180] ss:$16 sps:$4 sm:$0xff]   ;;  %v5454_v36 = vld [vmem:[#allocation4 + $0x2ec] ss:$16 sps:$4 sm:$0xff]  }
  0x6b   :  { %1232 = vmatpush1.bf16.msra.mxu0 %v5353_v37  ;;  %1273 = vmatpush1.bf16.msra.mxu1 %v5356_v38  ;;  %v5424_v16 = vld [vmem:[#allocation4 + $0x384] ss:$16 sps:$4 sm:$0xff]   ;;  %v5422_v18 = vld [vmem:[#allocation4 + $0x380] ss:$16 sps:$4 sm:$0xff]   ;;  %v163_v37 = vlaneseq }
  0x6c   :  { %1233 = vmatprep.subr.bf16.mxu0 %v5361_v39  ;;  %1274 = vmatprep.subr.bf16.mxu1 %v5364_v40  ;;  %v5427_v19 = vld [vmem:[#allocation4 + $0x164] ss:$16 sps:$4 sm:$0xff]   ;;  %v5425_v21 = vld [vmem:[#allocation4 + $0x160] ss:$16 sps:$4 sm:$0xff]  }
  0x6d   :  { %v5430_v20 = vld [vmem:[#allocation4 + $0x364] ss:$16 sps:$4 sm:$0xff]   ;;  %v5428_v22 = vld [vmem:[#allocation4 + $0x360] ss:$16 sps:$4 sm:$0xff]   ;;  %v164_v38 = vshrl.u32 %v163_v37, 7 }
  0x6e   :  { %v5433_v23 = vld [vmem:[#allocation4 + $0x144] ss:$16 sps:$4 sm:$0xff]   ;;  %v5431_v25 = vld [vmem:[#allocation4 + $0x140] ss:$16 sps:$4 sm:$0xff]   ;;  %v5494_v37 = vld [vmem:[#allocation4 + $0x208] ss:$16 sps:$4 sm:$0xff]  }
  0x6f   :  { %1234 = vmatpush1.bf16.msra.mxu0 %v5359_v41  ;;  %1275 = vmatpush1.bf16.msra.mxu1 %v5362_v42  ;;  %v5436_v24 = vld [vmem:[#allocation4 + $0x344] ss:$16 sps:$4 sm:$0xff]   ;;  %v5434_v26 = vld [vmem:[#allocation4 + $0x340] ss:$16 sps:$4 sm:$0xff]   ;;  %v6401_v40 = vsub.s32 0, %v164_v38  ;;  %v6403_v41 = vsub.s32 2, %v164_v38 }
  0x70   :  { %1235 = vmatprep.subr.bf16.mxu0 %v5367_v43  ;;  %1276 = vmatprep.subr.bf16.mxu1 %v5370_v44  ;;  %v5439_v27 = vld [vmem:[#allocation4 + $0x124] ss:$16 sps:$4 sm:$0xff]   ;;  %v5437_v29 = vld [vmem:[#allocation4 + $0x120] ss:$16 sps:$4 sm:$0xff]   ;;  %v6405_v42 = vsub.s32 1, %v164_v38  ;;  %v6407_v43 = vsub.s32 3, %v164_v38 }
  0x71   :  { %v5442_v28 = vld [vmem:[#allocation4 + $0x324] ss:$16 sps:$4 sm:$0xff]   ;;  %v5440_v30 = vld [vmem:[#allocation4 + $0x320] ss:$16 sps:$4 sm:$0xff]   ;;  %v5499_v38 = vld [vmem:[#allocation4 + $0x1ec] ss:$16 sps:$4 sm:$0xff]  }
  0x72   :  { %v5445_v31 = vld [vmem:[#allocation4 + $0x104] ss:$16 sps:$4 sm:$0xff]   ;;  %v5443_v33 = vld [vmem:[#allocation4 + $0x100] ss:$16 sps:$4 sm:$0xff]  }
  0x73   :  { %1236 = vmatpush1.bf16.msra.mxu0 %v5365_v45  ;;  %1277 = vmatpush1.bf16.msra.mxu1 %v5368_v46  ;;  %v5448_v32 = vld [vmem:[#allocation4 + $0x304] ss:$16 sps:$4 sm:$0xff]   ;;  %v5446_v34 = vld [vmem:[#allocation4 + $0x300] ss:$16 sps:$4 sm:$0xff]  }
  0x74   :  { %1237 = vmatprep.subr.bf16.mxu0 %v5373_v47  ;;  %1278 = vmatprep.subr.bf16.mxu1 %v5376_v48  ;;  %v160_v39 = vld [vmem:[%s6511_s2] sm:$0xf] }
  0x75   :  { %v166_v44 = vrot.slane %v160_v39, %v6401_v40  ;;  %v174_v45 = vrot.slane %v160_v39, %v6403_v41  ;;  %v170_v48 = vrot.slane %v160_v39, %v6405_v42 }
  0x77   :  { %1238 = vmatpush1.bf16.msra.mxu0 %v5371_v49  ;;  %1279 = vmatpush1.bf16.msra.mxu1 %v5374_v50  ;;  %v178_v49 = vrot.slane %v160_v39, %v6407_v43  ;;  %v5502_v39 = vld [vmem:[#allocation4 + $0x3ec] ss:$16 sps:$4 sm:$0xff]  }
  0x78   :  { %1239 = vmatprep.subr.bf16.mxu0 %v5379_v51  ;;  %1280 = vmatprep.subr.bf16.mxu1 %v5382_v52 }
  0x7b   :  { %1240 = vmatpush1.bf16.msra.mxu0 %v5377_v53  ;;  %1281 = vmatpush1.bf16.msra.mxu1 %v5380_v54 }
  0x7c   :  { %1241 = vmatprep.subr.bf16.mxu0 %v5385_v55  ;;  %1282 = vmatprep.subr.bf16.mxu1 %v5388_v56 }
  0x7f   :  { %1242 = vmatpush1.bf16.msra.mxu0 %v5383_v57  ;;  %1283 = vmatpush1.bf16.msra.mxu1 %v5386_v58 }
  0x80   :  { %1243 = vmatprep.subr.bf16.mxu0 %v5391_v59  ;;  %1284 = vmatprep.subr.bf16.mxu1 %v5394_v60 }
  0x83   :  { %1244 = vmatpush1.bf16.msra.mxu0 %v5389_v61  ;;  %1285 = vmatpush1.bf16.msra.mxu1 %v5392_v62 }
  0x84   :  { %1245 = vmatprep.subr.bf16.mxu0 %v5397_v63  ;;  %1286 = vmatprep.subr.bf16.mxu1 %v5400_v0 }
  0x87   :  { %1246 = vmatpush1.bf16.msra.mxu0 %v5395_v1  ;;  %1287 = vmatpush1.bf16.msra.mxu1 %v5398_v2  ;;  %v5449_v1 = vld [vmem:[#allocation4 + $0xe8] ss:$16 sps:$4 sm:$0xff]  }
  0x88   :  { %1247 = vmatprep.subr.bf16.mxu0 %v5403_v3  ;;  %1288 = vmatprep.subr.bf16.mxu1 %v5406_v4  ;;  %v5452_v4 = vld [vmem:[#allocation4 + $0x2e8] ss:$16 sps:$4 sm:$0xff]  }
  0x8b   :  { %1248 = vmatpush2.bf16.msra.mxu0 %v5401_v5  ;;  %1289 = vmatpush2.bf16.msra.mxu1 %v5404_v6 }
  0x8c   :  { %1249 = vmatprep.subr.bf16.mxu0 %v5409_v7  ;;  %1290 = vmatprep.subr.bf16.mxu1 %v5412_v8  ;;  %v5457_v7 = vld [vmem:[#allocation4 + $0xcc] ss:$16 sps:$4 sm:$0xff]  }
  0x8f   :  { %1250 = vmatpush2.bf16.msra.mxu0 %v5407_v9  ;;  %1291 = vmatpush2.bf16.msra.mxu1 %v5410_v10  ;;  %v5460_v10 = vld [vmem:[#allocation4 + $0x2cc] ss:$16 sps:$4 sm:$0xff]  }
  0x90   :  { %1251 = vmatprep.subr.bf16.mxu0 %v5415_v11  ;;  %1292 = vmatprep.subr.bf16.mxu1 %v5418_v12  ;;  %v5455_v12 = vld [vmem:[#allocation4 + $0xc8] ss:$16 sps:$4 sm:$0xff]  }
  0x93   :  { %1252 = vmatpush2.bf16.msra.mxu0 %v5413_v13  ;;  %1293 = vmatpush2.bf16.msra.mxu1 %v5416_v14  ;;  %v5458_v13 = vld [vmem:[#allocation4 + $0x2c8] ss:$16 sps:$4 sm:$0xff]   ;;  %v5463_v14 = vld [vmem:[#allocation4 + $0xac] ss:$16 sps:$4 sm:$0xff]  }
  0x94   :  { %1253 = vmatprep.subr.bf16.mxu0 %v5421_v15  ;;  %1294 = vmatprep.subr.bf16.mxu1 %v5424_v16  ;;  %v5466_v15 = vld [vmem:[#allocation4 + $0x2ac] ss:$16 sps:$4 sm:$0xff]   ;;  %v5461_v16 = vld [vmem:[#allocation4 + $0xa8] ss:$16 sps:$4 sm:$0xff]  }
  0x97   :  { %1254 = vmatpush2.bf16.msra.mxu0 %v5419_v17  ;;  %1295 = vmatpush2.bf16.msra.mxu1 %v5422_v18  ;;  %v5464_v17 = vld [vmem:[#allocation4 + $0x2a8] ss:$16 sps:$4 sm:$0xff]   ;;  %v5469_v18 = vld [vmem:[#allocation4 + $0x8c] ss:$16 sps:$4 sm:$0xff]  }
  0x98   :  { %1255 = vmatprep.subr.bf16.mxu0 %v5427_v19  ;;  %1296 = vmatprep.subr.bf16.mxu1 %v5430_v20  ;;  %v5472_v19 = vld [vmem:[#allocation4 + $0x28c] ss:$16 sps:$4 sm:$0xff]   ;;  %v5467_v20 = vld [vmem:[#allocation4 + $0x88] ss:$16 sps:$4 sm:$0xff]  }
  0x9b   :  { %1256 = vmatpush2.bf16.msra.mxu0 %v5425_v21  ;;  %1297 = vmatpush2.bf16.msra.mxu1 %v5428_v22  ;;  %v5470_v21 = vld [vmem:[#allocation4 + $0x288] ss:$16 sps:$4 sm:$0xff]   ;;  %v5475_v22 = vld [vmem:[#allocation4 + $0x6c] ss:$16 sps:$4 sm:$0xff]  }
  0x9c   :  { %1257 = vmatprep.subr.bf16.mxu0 %v5433_v23  ;;  %1298 = vmatprep.subr.bf16.mxu1 %v5436_v24  ;;  %v5478_v23 = vld [vmem:[#allocation4 + $0x26c] ss:$16 sps:$4 sm:$0xff]   ;;  %v5473_v24 = vld [vmem:[#allocation4 + $0x68] ss:$16 sps:$4 sm:$0xff]  }
  0x9f   :  { %1258 = vmatpush2.bf16.msra.mxu0 %v5431_v25  ;;  %1299 = vmatpush2.bf16.msra.mxu1 %v5434_v26  ;;  %v5476_v25 = vld [vmem:[#allocation4 + $0x268] ss:$16 sps:$4 sm:$0xff]   ;;  %v5481_v26 = vld [vmem:[#allocation4 + $0x4c] ss:$16 sps:$4 sm:$0xff]  }
  0xa0   :  { %1259 = vmatprep.subr.bf16.mxu0 %v5439_v27  ;;  %1300 = vmatprep.subr.bf16.mxu1 %v5442_v28  ;;  %v5484_v27 = vld [vmem:[#allocation4 + $0x24c] ss:$16 sps:$4 sm:$0xff]   ;;  %v5479_v28 = vld [vmem:[#allocation4 + $0x48] ss:$16 sps:$4 sm:$0xff]  }
  0xa3   :  { %1260 = vmatpush2.bf16.msra.mxu0 %v5437_v29  ;;  %1301 = vmatpush2.bf16.msra.mxu1 %v5440_v30  ;;  %v5482_v29 = vld [vmem:[#allocation4 + $0x248] ss:$16 sps:$4 sm:$0xff]   ;;  %v5487_v30 = vld [vmem:[#allocation4 + $0x2c] ss:$16 sps:$4 sm:$0xff]  }
  0xa4   :  { %1261 = vmatprep.subr.bf16.mxu0 %v5445_v31  ;;  %1302 = vmatprep.subr.bf16.mxu1 %v5448_v32  ;;  %v5490_v31 = vld [vmem:[#allocation4 + $0x22c] ss:$16 sps:$4 sm:$0xff]   ;;  %v5485_v32 = vld [vmem:[#allocation4 + $0x28] ss:$16 sps:$4 sm:$0xff]  }
  0xa7   :  { %1262 = vmatpush2.bf16.msra.mxu0 %v5443_v33  ;;  %1303 = vmatpush2.bf16.msra.mxu1 %v5446_v34  ;;  %v5488_v33 = vld [vmem:[#allocation4 + $0x228] ss:$16 sps:$4 sm:$0xff]   ;;  %v5493_v34 = vld [vmem:[#allocation4 + $0xc] ss:$16 sps:$4 sm:$0xff]  }
  0xa8   :  { %1313 = vmatprep.subr.bf16.mxu0 %v5451_v35  ;;  %1354 = vmatprep.subr.bf16.mxu1 %v5454_v36  ;;  %v5496_v35 = vld [vmem:[#allocation4 + $0x20c] ss:$16 sps:$4 sm:$0xff]   ;;  %v5491_v36 = vld [vmem:[#allocation4 + $0x8] ss:$16 sps:$4 sm:$0xff]  }
 0x12a   :  { %v377_v46 = vpop.f32.mrf.mxu0  ;;  %v418_v47 = vpop.f32.mrf.mxu1 }
 0x12b   :  { %v378_v50 = vadd.f32 %v377_v46, %v166_v44  ;;  %v419_v51 = vadd.f32 %v418_v47, %v174_v45  ;;  %v5497_v44 = vld [vmem:[#allocation4 + $0x1e8] ss:$16 sps:$4 sm:$0xff]   ;;  %v5505_v46 = vld [vmem:[#allocation4 + $0x1cc] ss:$16 sps:$4 sm:$0xff]  }
 0x12c   :  { %v379_v52 = vpop.f32.mrf.mxu0  ;;  %v420_v53 = vpop.f32.mrf.mxu1  ;;  %v5500_v45 = vld [vmem:[#allocation4 + $0x3e8] ss:$16 sps:$4 sm:$0xff]   ;;  %v5508_v47 = vld [vmem:[#allocation4 + $0x3cc] ss:$16 sps:$4 sm:$0xff]  }
 0x12d   :  { %v429_v54 = vmul.f32 0.2, %v378_v50  ;;  %vm425_vm0 = vcmp.gt.f32.partialorder %v378_v50, 0.0  ;;  %v431_v55 = vmul.f32 0.2, %v419_v51  ;;  %v380_v56 = vadd.f32 %v379_v52, %v170_v48 }
 0x12e   :  { %v421_v57 = vadd.f32 %v420_v53, %v178_v49  ;;  %v381_v58 = vpop.f32.mrf.mxu0  ;;  %v422_v59 = vpop.f32.mrf.mxu1  ;;  %vm427_vm1 = vcmp.gt.f32.partialorder %v419_v51, 0.0  ;;  %v5503_v48 = vld [vmem:[#allocation4 + $0x1c8] ss:$16 sps:$4 sm:$0xff]  }
 0x12f   :  { %vm426_vm2 = vcmp.gt.f32.partialorder %v380_v56, 0.0  ;;  %v430_v60 = vmul.f32 0.2, %v380_v56  ;;  %v433_v63 = vsel %vm425_vm0, %v378_v50, %v429_v54  ;;  %v435_v2 = vsel %vm427_vm1, %v419_v51, %v431_v55  ;;  %v5506_v49 = vld [vmem:[#allocation4 + $0x3c8] ss:$16 sps:$4 sm:$0xff]  }
 0x130   :  { %v382_v61 = vpop.f32.mrf.mxu0  ;;  %v423_v62 = vpop.f32.mrf.mxu1  ;;  %vm428_vm3 = vcmp.gt.f32.partialorder %v421_v57, 0.0  ;;  %v432_v0 = vmul.f32 0.2, %v421_v57  ;;  %v6413_v8 = vpack.c.bf16 %v433_v63, %v433_v63  ;;  %v6415_v11 = vpack.c.bf16 %v435_v2, %v435_v2  ;;  %v5511_v50 = vld [vmem:[#allocation4 + $0x1ac] ss:$16 sps:$4 sm:$0xff]  }
 0x131   :  { %v434_v3 = vsel %vm426_vm2, %v380_v56, %v430_v60  ;;  %v5514_v51 = vld [vmem:[#allocation4 + $0x3ac] ss:$16 sps:$4 sm:$0xff]   ;;  %v5509_v52 = vld [vmem:[#allocation4 + $0x1a8] ss:$16 sps:$4 sm:$0xff]  }
 0x132   :  { %v567_v5 = vpack.c.bf16 %v434_v3, %v434_v3  ;;  %v436_v6 = vsel %vm428_vm3, %v421_v57, %v432_v0  ;;  %v5512_v53 = vld [vmem:[#allocation4 + $0x3a8] ss:$16 sps:$4 sm:$0xff]   ;;  %v5517_v54 = vld [vmem:[#allocation4 + $0x18c] ss:$16 sps:$4 sm:$0xff]  }
 0x133   :  { %v569_v9 = vpack.c.bf16 %v436_v6, %v436_v6  ;;  %v5520_v55 = vld [vmem:[#allocation4 + $0x38c] ss:$16 sps:$4 sm:$0xff]   ;;  %v5515_v56 = vld [vmem:[#allocation4 + $0x188] ss:$16 sps:$4 sm:$0xff]  }
 0x134   :  { %1263 = vmatprep.mubr.bf16.mxu0 %v567_v5  ;;  %v5518_v57 = vld [vmem:[#allocation4 + $0x388] ss:$16 sps:$4 sm:$0xff]   ;;  %v5523_v58 = vld [vmem:[#allocation4 + $0x16c] ss:$16 sps:$4 sm:$0xff]  }
 0x135   :  { %1304 = vmatprep.mubr.bf16.mxu1 %v569_v9  ;;  %1264 = vmatmul.mubr.bf16.vlgmr.msra.gmra.mxu0 %v6413_v8  ;;  %v5526_v59 = vld [vmem:[#allocation4 + $0x36c] ss:$16 sps:$4 sm:$0xff]   ;;  %v5521_v60 = vld [vmem:[#allocation4 + $0x168] ss:$16 sps:$4 sm:$0xff]  }
 0x136   :  { %1305 = vmatmul.mubr.bf16.vlgmr.msra.gmra.mxu1 %v6415_v11  ;;  %1314 = vmatpush1.bf16.msra.mxu0 %v5449_v1  ;;  %v5524_v61 = vld [vmem:[#allocation4 + $0x368] ss:$16 sps:$4 sm:$0xff]   ;;  %v5529_v62 = vld [vmem:[#allocation4 + $0x14c] ss:$16 sps:$4 sm:$0xff]  }
 0x137   :  { %1355 = vmatpush1.bf16.msra.mxu1 %v5452_v4  ;;  %1345 = vmatprep.mubr.bf16.mxu0 %v567_v5  ;;  %v5532_v63 = vld [vmem:[#allocation4 + $0x34c] ss:$16 sps:$4 sm:$0xff]   ;;  %v5527_v0 = vld [vmem:[#allocation4 + $0x148] ss:$16 sps:$4 sm:$0xff]  }
 0x138   :  { %1386 = vmatprep.mubr.bf16.mxu1 %v569_v9  ;;  %1315 = vmatprep.subr.bf16.mxu0 %v5457_v7  ;;  %v5530_v1 = vld [vmem:[#allocation4 + $0x348] ss:$16 sps:$4 sm:$0xff]   ;;  %v5535_v2 = vld [vmem:[#allocation4 + $0x12c] ss:$16 sps:$4 sm:$0xff]  }
 0x139   :  { %1356 = vmatprep.subr.bf16.mxu1 %v5460_v10  ;;  %v5538_v3 = vld [vmem:[#allocation4 + $0x32c] ss:$16 sps:$4 sm:$0xff]   ;;  %v5533_v4 = vld [vmem:[#allocation4 + $0x128] ss:$16 sps:$4 sm:$0xff]  }
 0x13a   :  { %1316 = vmatpush1.bf16.msra.mxu0 %v5455_v12  ;;  %v5536_v5 = vld [vmem:[#allocation4 + $0x328] ss:$16 sps:$4 sm:$0xff]   ;;  %v5541_v6 = vld [vmem:[#allocation4 + $0x10c] ss:$16 sps:$4 sm:$0xff]   ;;  %v5547_v12 = vld [vmem:[#allocation6 + $0xe4] ss:$16 sps:$4 sm:$0xff]  }
 0x13b   :  { %1357 = vmatpush1.bf16.msra.mxu1 %v5458_v13  ;;  %1317 = vmatprep.subr.bf16.mxu0 %v5463_v14  ;;  %v5544_v7 = vld [vmem:[#allocation4 + $0x30c] ss:$16 sps:$4 sm:$0xff]   ;;  %v5539_v9 = vld [vmem:[#allocation4 + $0x108] ss:$16 sps:$4 sm:$0xff]   ;;  %v5545_v13 = vld [vmem:[#allocation6 + $0xe0] ss:$16 sps:$4 sm:$0xff]  }
 0x13c   :  { %1358 = vmatprep.subr.bf16.mxu1 %v5466_v15  ;;  %v5542_v10 = vld [vmem:[#allocation4 + $0x308] ss:$16 sps:$4 sm:$0xff]   ;;  %v5550_v14 = vld [vmem:[#allocation6 + $0xc4] ss:$16 sps:$4 sm:$0xff]   ;;  %v5548_v15 = vld [vmem:[#allocation6 + $0xc0] ss:$16 sps:$4 sm:$0xff]  }
 0x13e   :  { %1318 = vmatpush1.bf16.msra.mxu0 %v5461_v16  ;;  %v5553_v16 = vld [vmem:[#allocation6 + $0xa4] ss:$16 sps:$4 sm:$0xff]  }
 0x13f   :  { %1359 = vmatpush1.bf16.msra.mxu1 %v5464_v17  ;;  %1319 = vmatprep.subr.bf16.mxu0 %v5469_v18  ;;  %v5551_v17 = vld [vmem:[#allocation6 + $0xa0] ss:$16 sps:$4 sm:$0xff]   ;;  %v5556_v18 = vld [vmem:[#allocation6 + $0x84] ss:$16 sps:$4 sm:$0xff]  }
 0x140   :  { %1360 = vmatprep.subr.bf16.mxu1 %v5472_v19  ;;  %v5593_v19 = vld [vmem:[#allocation6 + $0x2e0] ss:$16 sps:$4 sm:$0xff]  }
 0x142   :  { %1320 = vmatpush1.bf16.msra.mxu0 %v5467_v20  ;;  %v5554_v20 = vld [vmem:[#allocation6 + $0x80] ss:$16 sps:$4 sm:$0xff]  }
 0x143   :  { %1361 = vmatpush1.bf16.msra.mxu1 %v5470_v21  ;;  %1321 = vmatprep.subr.bf16.mxu0 %v5475_v22  ;;  %v5595_v21 = vld [vmem:[#allocation6 + $0x2e4] ss:$16 sps:$4 sm:$0xff]  }
 0x144   :  { %1362 = vmatprep.subr.bf16.mxu1 %v5478_v23  ;;  %v5559_v22 = vld [vmem:[#allocation6 + $0x64] ss:$16 sps:$4 sm:$0xff]   ;;  %v5599_v23 = vld [vmem:[#allocation6 + $0x2c0] ss:$16 sps:$4 sm:$0xff]  }
 0x146   :  { %1322 = vmatpush1.bf16.msra.mxu0 %v5473_v24  ;;  %v5601_v24 = vld [vmem:[#allocation6 + $0x2c4] ss:$16 sps:$4 sm:$0xff]  }
 0x147   :  { %1363 = vmatpush1.bf16.msra.mxu1 %v5476_v25  ;;  %1323 = vmatprep.subr.bf16.mxu0 %v5481_v26  ;;  %v5560_v25 = vld [vmem:[#allocation6 + $0x40] ss:$16 sps:$4 sm:$0xff]   ;;  %v5565_v26 = vld [vmem:[#allocation6 + $0x24] ss:$16 sps:$4 sm:$0xff]  }
 0x148   :  { %1364 = vmatprep.subr.bf16.mxu1 %v5484_v27  ;;  %v5605_v27 = vld [vmem:[#allocation6 + $0x2a0] ss:$16 sps:$4 sm:$0xff]  }
 0x14a   :  { %1324 = vmatpush1.bf16.msra.mxu0 %v5479_v28  ;;  %v5607_v28 = vld [vmem:[#allocation6 + $0x2a4] ss:$16 sps:$4 sm:$0xff]  }
 0x14b   :  { %1365 = vmatpush1.bf16.msra.mxu1 %v5482_v29  ;;  %1325 = vmatprep.subr.bf16.mxu0 %v5487_v30  ;;  %v5563_v29 = vld [vmem:[#allocation6 + $0x20] ss:$16 sps:$4 sm:$0xff]   ;;  %v5568_v30 = vld [vmem:[#allocation6 + $0x4] ss:$16 sps:$4 sm:$0xff]  }
 0x14c   :  { %1366 = vmatprep.subr.bf16.mxu1 %v5490_v31  ;;  %v5611_v31 = vld [vmem:[#allocation6 + $0x280] ss:$16 sps:$4 sm:$0xff]  }
 0x14e   :  { %1326 = vmatpush1.bf16.msra.mxu0 %v5485_v32  ;;  %v5613_v32 = vld [vmem:[#allocation6 + $0x284] ss:$16 sps:$4 sm:$0xff]  }
 0x14f   :  { %1367 = vmatpush1.bf16.msra.mxu1 %v5488_v33  ;;  %1327 = vmatprep.subr.bf16.mxu0 %v5493_v34  ;;  %v5566_v33 = vld [vmem:[#allocation6] ss:$16 sps:$4 sm:$0xff]   ;;  %v5571_v34 = vld [vmem:[#allocation6 + $0x1e4] ss:$16 sps:$4 sm:$0xff]  }
 0x150   :  { %1368 = vmatprep.subr.bf16.mxu1 %v5496_v35  ;;  %v5617_v35 = vld [vmem:[#allocation6 + $0x260] ss:$16 sps:$4 sm:$0xff]  }
 0x152   :  { %1328 = vmatpush1.bf16.msra.mxu0 %v5491_v36  ;;  %v5619_v36 = vld [vmem:[#allocation6 + $0x264] ss:$16 sps:$4 sm:$0xff]  }
 0x153   :  { %1369 = vmatpush1.bf16.msra.mxu1 %v5494_v37  ;;  %1329 = vmatprep.subr.bf16.mxu0 %v5499_v38  ;;  %v5569_v37 = vld [vmem:[#allocation6 + $0x1e0] ss:$16 sps:$4 sm:$0xff]   ;;  %v5574_v38 = vld [vmem:[#allocation6 + $0x1c4] ss:$16 sps:$4 sm:$0xff]  }
 0x154   :  { %1370 = vmatprep.subr.bf16.mxu1 %v5502_v39  ;;  %v5623_v39 = vld [vmem:[#allocation6 + $0x240] ss:$16 sps:$4 sm:$0xff]  }
 0x156   :  { %1330 = vmatpush2.bf16.msra.mxu0 %v5497_v44  ;;  %v5625_v44 = vld [vmem:[#allocation6 + $0x244] ss:$16 sps:$4 sm:$0xff]  }
 0x157   :  { %1371 = vmatpush2.bf16.msra.mxu1 %v5500_v45  ;;  %1331 = vmatprep.subr.bf16.mxu0 %v5505_v46  ;;  %v5572_v45 = vld [vmem:[#allocation6 + $0x1c0] ss:$16 sps:$4 sm:$0xff]   ;;  %v5577_v46 = vld [vmem:[#allocation6 + $0x1a4] ss:$16 sps:$4 sm:$0xff]  }
 0x158   :  { %1372 = vmatprep.subr.bf16.mxu1 %v5508_v47  ;;  %v5629_v47 = vld [vmem:[#allocation6 + $0x220] ss:$16 sps:$4 sm:$0xff]  }
 0x15a   :  { %1332 = vmatpush2.bf16.msra.mxu0 %v5503_v48  ;;  %v5631_v48 = vld [vmem:[#allocation6 + $0x224] ss:$16 sps:$4 sm:$0xff]  }
 0x15b   :  { %1373 = vmatpush2.bf16.msra.mxu1 %v5506_v49  ;;  %1333 = vmatprep.subr.bf16.mxu0 %v5511_v50  ;;  %v5575_v49 = vld [vmem:[#allocation6 + $0x1a0] ss:$16 sps:$4 sm:$0xff]   ;;  %v5580_v50 = vld [vmem:[#allocation6 + $0x184] ss:$16 sps:$4 sm:$0xff]  }
 0x15c   :  { %1374 = vmatprep.subr.bf16.mxu1 %v5514_v51  ;;  %v5635_v51 = vld [vmem:[#allocation6 + $0x200] ss:$16 sps:$4 sm:$0xff]  }
 0x15e   :  { %1334 = vmatpush2.bf16.msra.mxu0 %v5509_v52  ;;  %v5637_v52 = vld [vmem:[#allocation6 + $0x204] ss:$16 sps:$4 sm:$0xff]  }
 0x15f   :  { %1375 = vmatpush2.bf16.msra.mxu1 %v5512_v53  ;;  %1335 = vmatprep.subr.bf16.mxu0 %v5517_v54  ;;  %v5578_v53 = vld [vmem:[#allocation6 + $0x180] ss:$16 sps:$4 sm:$0xff]   ;;  %v5583_v54 = vld [vmem:[#allocation6 + $0x164] ss:$16 sps:$4 sm:$0xff]  }
 0x160   :  { %1376 = vmatprep.subr.bf16.mxu1 %v5520_v55  ;;  %v5641_v55 = vld [vmem:[#allocation6 + $0x3e0] ss:$16 sps:$4 sm:$0xff]  }
 0x162   :  { %1336 = vmatpush2.bf16.msra.mxu0 %v5515_v56  ;;  %v5643_v56 = vld [vmem:[#allocation6 + $0x3e4] ss:$16 sps:$4 sm:$0xff]  }
 0x163   :  { %1377 = vmatpush2.bf16.msra.mxu1 %v5518_v57  ;;  %1337 = vmatprep.subr.bf16.mxu0 %v5523_v58  ;;  %v5581_v57 = vld [vmem:[#allocation6 + $0x160] ss:$16 sps:$4 sm:$0xff]   ;;  %v5586_v58 = vld [vmem:[#allocation6 + $0x144] ss:$16 sps:$4 sm:$0xff]  }
 0x164   :  { %1378 = vmatprep.subr.bf16.mxu1 %v5526_v59  ;;  %v5647_v59 = vld [vmem:[#allocation6 + $0x3c0] ss:$16 sps:$4 sm:$0xff]  }
 0x166   :  { %1338 = vmatpush2.bf16.msra.mxu0 %v5521_v60  ;;  %v5649_v60 = vld [vmem:[#allocation6 + $0x3c4] ss:$16 sps:$4 sm:$0xff]  }
 0x167   :  { %1379 = vmatpush2.bf16.msra.mxu1 %v5524_v61  ;;  %1339 = vmatprep.subr.bf16.mxu0 %v5529_v62  ;;  %v5584_v61 = vld [vmem:[#allocation6 + $0x140] ss:$16 sps:$4 sm:$0xff]   ;;  %v5589_v62 = vld [vmem:[#allocation6 + $0x124] ss:$16 sps:$4 sm:$0xff]  }
 0x168   :  { %1380 = vmatprep.subr.bf16.mxu1 %v5532_v63  ;;  %v5653_v63 = vld [vmem:[#allocation6 + $0x3a0] ss:$16 sps:$4 sm:$0xff]  }
 0x16a   :  { %1340 = vmatpush2.bf16.msra.mxu0 %v5527_v0  ;;  %v5655_v0 = vld [vmem:[#allocation6 + $0x3a4] ss:$16 sps:$4 sm:$0xff]  }
 0x16b   :  { %1381 = vmatpush2.bf16.msra.mxu1 %v5530_v1  ;;  %1341 = vmatprep.subr.bf16.mxu0 %v5535_v2  ;;  %v5587_v1 = vld [vmem:[#allocation6 + $0x120] ss:$16 sps:$4 sm:$0xff]   ;;  %v5592_v2 = vld [vmem:[#allocation6 + $0x104] ss:$16 sps:$4 sm:$0xff]  }
 0x16c   :  { %1382 = vmatprep.subr.bf16.mxu1 %v5538_v3  ;;  %v5659_v3 = vld [vmem:[#allocation6 + $0x380] ss:$16 sps:$4 sm:$0xff]  }
 0x16e   :  { %1342 = vmatpush2.bf16.msra.mxu0 %v5533_v4  ;;  %v5661_v4 = vld [vmem:[#allocation6 + $0x384] ss:$16 sps:$4 sm:$0xff]  }
 0x16f   :  { %1383 = vmatpush2.bf16.msra.mxu1 %v5536_v5  ;;  %1343 = vmatprep.subr.bf16.mxu0 %v5541_v6  ;;  %v5590_v5 = vld [vmem:[#allocation6 + $0x100] ss:$16 sps:$4 sm:$0xff]   ;;  %v5598_v6 = vld [vmem:[#allocation6 + $0xec] ss:$16 sps:$4 sm:$0xff]  }
 0x170   :  { %1384 = vmatprep.subr.bf16.mxu1 %v5544_v7  ;;  %v5665_v7 = vld [vmem:[#allocation6 + $0x360] ss:$16 sps:$4 sm:$0xff]  }
 0x172   :  { %1344 = vmatpush2.bf16.msra.mxu0 %v5539_v9  ;;  %v5667_v9 = vld [vmem:[#allocation6 + $0x364] ss:$16 sps:$4 sm:$0xff]  }
 0x173   :  { %1385 = vmatpush2.bf16.msra.mxu1 %v5542_v10  ;;  %2201 = vmatprep.subr.bf16.mxu0 %v5547_v12  ;;  %v5673_v10 = vld [vmem:[#allocation6 + $0x344] ss:$16 sps:$4 sm:$0xff]   ;;  %v5671_v12 = vld [vmem:[#allocation6 + $0x340] ss:$16 sps:$4 sm:$0xff]  }
 0x174   :  { %2242 = vmatprep.subr.bf16.mxu1 %v5595_v21 }
 0x175   :  { %1346 = vmatmul.mubr.bf16.vlgmr.msra.gmra.mxu0 %v6413_v8  ;;  %v5557_v8 = vld [vmem:[#allocation6 + $0x60] ss:$16 sps:$4 sm:$0xff]  }
 0x176   :  { %1387 = vmatmul.mubr.bf16.vlgmr.msra.gmra.mxu1 %v6415_v11  ;;  %2202 = vmatpush1.bf16.msra.mxu0 %v5545_v13  ;;  %v5562_v11 = vld [vmem:[#allocation6 + $0x44] ss:$16 sps:$4 sm:$0xff]  }
 0x177   :  { %2203 = vmatprep.subr.bf16.mxu0 %v5550_v14  ;;  %2243 = vmatpush1.bf16.msra.mxu1 %v5593_v19  ;;  %v5679_v13 = vld [vmem:[#allocation6 + $0x324] ss:$16 sps:$4 sm:$0xff]   ;;  %v5677_v14 = vld [vmem:[#allocation6 + $0x320] ss:$16 sps:$4 sm:$0xff]  }
 0x178   :  { %2244 = vmatprep.subr.bf16.mxu1 %v5601_v24 }
 0x17a   :  { %2204 = vmatpush1.bf16.msra.mxu0 %v5548_v15  ;;  %v5685_v15 = vld [vmem:[#allocation6 + $0x304] ss:$16 sps:$4 sm:$0xff]  }
 0x17b   :  { %2205 = vmatprep.subr.bf16.mxu0 %v5553_v16  ;;  %2245 = vmatpush1.bf16.msra.mxu1 %v5599_v23  ;;  %v5683_v16 = vld [vmem:[#allocation6 + $0x300] ss:$16 sps:$4 sm:$0xff]  }
 0x17c   :  { %2246 = vmatprep.subr.bf16.mxu1 %v5607_v28 }
 0x17e   :  { %2206 = vmatpush1.bf16.msra.mxu0 %v5551_v17  ;;  %v5691_v17 = vld [vmem:[#allocation6 + $0x2ec] ss:$16 sps:$4 sm:$0xff]  }
 0x17f   :  { %2207 = vmatprep.subr.bf16.mxu0 %v5556_v18  ;;  %2247 = vmatpush1.bf16.msra.mxu1 %v5605_v27  ;;  %v6424_v18 = vld [vmem:[%s6513_s4] sm:$0xf] }
 0x180   :  { %2248 = vmatprep.subr.bf16.mxu1 %v5613_v32  ;;  %v574_v19 = vrot.slane %v6424_v18, %v6401_v40 }
 0x182   :  { %2208 = vmatpush1.bf16.msra.mxu0 %v5554_v20  ;;  %v578_v20 = vrot.slane %v6424_v18, %v6405_v42 }
 0x183   :  { %2209 = vmatprep.subr.bf16.mxu0 %v5559_v22  ;;  %2249 = vmatpush1.bf16.msra.mxu1 %v5611_v31 }
 0x184   :  { %2250 = vmatprep.subr.bf16.mxu1 %v5619_v36  ;;  %v5596_v36 = vld [vmem:[#allocation6 + $0xe8] ss:$16 sps:$4 sm:$0xff]  }
 0x186   :  { %2210 = vmatpush1.bf16.msra.mxu0 %v5557_v8 }
 0x187   :  { %2211 = vmatprep.subr.bf16.mxu0 %v5562_v11  ;;  %2251 = vmatpush1.bf16.msra.mxu1 %v5617_v35 }
 0x188   :  { %2252 = vmatprep.subr.bf16.mxu1 %v5625_v44  ;;  %v5610_v44 = vld [vmem:[#allocation6 + $0xac] ss:$16 sps:$4 sm:$0xff]  }
 0x18a   :  { %2212 = vmatpush1.bf16.msra.mxu0 %v5560_v25 }
 0x18b   :  { %2213 = vmatprep.subr.bf16.mxu0 %v5565_v26  ;;  %2253 = vmatpush1.bf16.msra.mxu1 %v5623_v39  ;;  %v5602_v39 = vld [vmem:[#allocation6 + $0xc8] ss:$16 sps:$4 sm:$0xff]  }
 0x18c   :  { %2254 = vmatprep.subr.bf16.mxu1 %v5631_v48  ;;  %v5622_v48 = vld [vmem:[#allocation6 + $0x6c] ss:$16 sps:$4 sm:$0xff]  }
 0x18e   :  { %2214 = vmatpush1.bf16.msra.mxu0 %v5563_v29 }
 0x18f   :  { %2215 = vmatprep.subr.bf16.mxu0 %v5568_v30  ;;  %2255 = vmatpush1.bf16.msra.mxu1 %v5629_v47  ;;  %v5614_v47 = vld [vmem:[#allocation6 + $0x88] ss:$16 sps:$4 sm:$0xff]  }
 0x190   :  { %2256 = vmatprep.subr.bf16.mxu1 %v5637_v52  ;;  %v5634_v52 = vld [vmem:[#allocation6 + $0x2c] ss:$16 sps:$4 sm:$0xff]  }
 0x192   :  { %2216 = vmatpush1.bf16.msra.mxu0 %v5566_v33 }
 0x193   :  { %2217 = vmatprep.subr.bf16.mxu0 %v5571_v34  ;;  %2257 = vmatpush1.bf16.msra.mxu1 %v5635_v51  ;;  %v5626_v51 = vld [vmem:[#allocation6 + $0x48] ss:$16 sps:$4 sm:$0xff]  }
 0x194   :  { %2258 = vmatprep.subr.bf16.mxu1 %v5643_v56  ;;  %v5646_v56 = vld [vmem:[#allocation6 + $0x1ec] ss:$16 sps:$4 sm:$0xff]  }
 0x196   :  { %2218 = vmatpush2.bf16.msra.mxu0 %v5569_v37 }
 0x197   :  { %2219 = vmatprep.subr.bf16.mxu0 %v5574_v38  ;;  %2259 = vmatpush2.bf16.msra.mxu1 %v5641_v55  ;;  %v5604_v38 = vld [vmem:[#allocation6 + $0xcc] ss:$16 sps:$4 sm:$0xff]   ;;  %v5638_v55 = vld [vmem:[#allocation6 + $0x8] ss:$16 sps:$4 sm:$0xff]  }
 0x198   :  { %2260 = vmatprep.subr.bf16.mxu1 %v5649_v60  ;;  %v5658_v60 = vld [vmem:[#allocation6 + $0x1ac] ss:$16 sps:$4 sm:$0xff]  }
 0x19a   :  { %2220 = vmatpush2.bf16.msra.mxu0 %v5572_v45  ;;  %v5608_v45 = vld [vmem:[#allocation6 + $0xa8] ss:$16 sps:$4 sm:$0xff]  }
 0x19b   :  { %2221 = vmatprep.subr.bf16.mxu0 %v5577_v46  ;;  %2261 = vmatpush2.bf16.msra.mxu1 %v5647_v59  ;;  %v5616_v46 = vld [vmem:[#allocation6 + $0x8c] ss:$16 sps:$4 sm:$0xff]   ;;  %v5650_v59 = vld [vmem:[#allocation6 + $0x1c8] ss:$16 sps:$4 sm:$0xff]  }
 0x19c   :  { %2262 = vmatprep.subr.bf16.mxu1 %v5655_v0  ;;  %v5670_v0 = vld [vmem:[#allocation6 + $0x16c] ss:$16 sps:$4 sm:$0xff]  }
 0x19e   :  { %2222 = vmatpush2.bf16.msra.mxu0 %v5575_v49  ;;  %v5620_v49 = vld [vmem:[#allocation6 + $0x68] ss:$16 sps:$4 sm:$0xff]  }
 0x19f   :  { %2223 = vmatprep.subr.bf16.mxu0 %v5580_v50  ;;  %2263 = vmatpush2.bf16.msra.mxu1 %v5653_v63  ;;  %v5628_v50 = vld [vmem:[#allocation6 + $0x4c] ss:$16 sps:$4 sm:$0xff]   ;;  %v5662_v63 = vld [vmem:[#allocation6 + $0x188] ss:$16 sps:$4 sm:$0xff]  }
 0x1a0   :  { %2264 = vmatprep.subr.bf16.mxu1 %v5661_v4  ;;  %v5674_v4 = vld [vmem:[#allocation6 + $0x148] ss:$16 sps:$4 sm:$0xff]  }
 0x1a2   :  { %2224 = vmatpush2.bf16.msra.mxu0 %v5578_v53  ;;  %v5632_v53 = vld [vmem:[#allocation6 + $0x28] ss:$16 sps:$4 sm:$0xff]  }
 0x1a3   :  { %2225 = vmatprep.subr.bf16.mxu0 %v5583_v54  ;;  %2265 = vmatpush2.bf16.msra.mxu1 %v5659_v3  ;;  %v5640_v54 = vld [vmem:[#allocation6 + $0xc] ss:$16 sps:$4 sm:$0xff]   ;;  %v582_v3 = vrot.slane %v6424_v18, %v6403_v41 }
 0x1a4   :  { %2266 = vmatprep.subr.bf16.mxu1 %v5667_v9 }
 0x1a6   :  { %2226 = vmatpush2.bf16.msra.mxu0 %v5581_v57  ;;  %v5644_v57 = vld [vmem:[#allocation6 + $0x1e8] ss:$16 sps:$4 sm:$0xff]  }
 0x1a7   :  { %2227 = vmatprep.subr.bf16.mxu0 %v5586_v58  ;;  %2267 = vmatpush2.bf16.msra.mxu1 %v5665_v7  ;;  %v5652_v58 = vld [vmem:[#allocation6 + $0x1cc] ss:$16 sps:$4 sm:$0xff]  }
 0x1a8   :  { %2268 = vmatprep.subr.bf16.mxu1 %v5673_v10 }
 0x1aa   :  { %2228 = vmatpush2.bf16.msra.mxu0 %v5584_v61  ;;  %v5656_v61 = vld [vmem:[#allocation6 + $0x1a8] ss:$16 sps:$4 sm:$0xff]  }
 0x1ab   :  { %2229 = vmatprep.subr.bf16.mxu0 %v5589_v62  ;;  %2269 = vmatpush2.bf16.msra.mxu1 %v5671_v12  ;;  %v5664_v62 = vld [vmem:[#allocation6 + $0x18c] ss:$16 sps:$4 sm:$0xff]  }
 0x1ac   :  { %2270 = vmatprep.subr.bf16.mxu1 %v5679_v13  ;;  %v5680_v13 = vld [vmem:[#allocation6 + $0x128] ss:$16 sps:$4 sm:$0xff]  }
 0x1ae   :  { %2230 = vmatpush2.bf16.msra.mxu0 %v5587_v1  ;;  %v5668_v1 = vld [vmem:[#allocation6 + $0x168] ss:$16 sps:$4 sm:$0xff]  }
 0x1af   :  { %2231 = vmatprep.subr.bf16.mxu0 %v5592_v2  ;;  %2271 = vmatpush2.bf16.msra.mxu1 %v5677_v14  ;;  %v5676_v2 = vld [vmem:[#allocation6 + $0x14c] ss:$16 sps:$4 sm:$0xff]  }
 0x1b0   :  { %2272 = vmatprep.subr.bf16.mxu1 %v5685_v15 }
 0x1b2   :  { %2232 = vmatpush2.bf16.msra.mxu0 %v5590_v5  ;;  %v586_v5 = vrot.slane %v6424_v18, %v6407_v43  ;;  %v5686_v18 = vld [vmem:[#allocation6 + $0x108] ss:$16 sps:$4 sm:$0xff]  }
 0x1b3   :  { %2283 = vmatprep.subr.bf16.mxu0 %v5598_v6  ;;  %2273 = vmatpush2.bf16.msra.mxu1 %v5683_v16  ;;  %v5682_v6 = vld [vmem:[#allocation6 + $0x12c] ss:$16 sps:$4 sm:$0xff]  }
 0x1b4   :  { %2324 = vmatprep.subr.bf16.mxu1 %v5691_v17  ;;  %v5688_v17 = vld [vmem:[#allocation6 + $0x10c] ss:$16 sps:$4 sm:$0xff]  }
 0x1f5   :  { %v1265_v21 = vpop.f32.mrf.mxu0 }
 0x1f6   :  { %v1266_v22 = vadd.f32 %v1265_v21, %v574_v19  ;;  %v1306_v8 = vpop.f32.mrf.mxu1 }
 0x1f7   :  { %v1267_v11 = vpop.f32.mrf.mxu0 }
 0x1f8   :  { %v1307_v23 = vadd.f32 %v1306_v8, %v1266_v22  ;;  %v1268_v24 = vadd.f32 %v1267_v11, %v578_v20  ;;  %v1308_v25 = vpop.f32.mrf.mxu1 }
 0x1f9   :  { %v1269_v26 = vpop.f32.mrf.mxu0 }
 0x1fa   :  { %vm1395_vm4 = vcmp.gt.f32.partialorder %v1307_v23, 0.0  ;;  %v1399_v27 = vmul.f32 0.2, %v1307_v23  ;;  %v1309_v28 = vadd.f32 %v1308_v25, %v1268_v24  ;;  %v1310_v29 = vpop.f32.mrf.mxu1 }
 0x1fb   :  { %v1270_v30 = vpop.f32.mrf.mxu0  ;;  %v5694_v29 = vld [vmem:[#allocation6 + $0x2cc] ss:$16 sps:$4 sm:$0xff]  }
 0x1fc   :  { %vm1396_vm5 = vcmp.gt.f32.partialorder %v1309_v28, 0.0  ;;  %v1400_v31 = vmul.f32 0.2, %v1309_v28  ;;  %v1311_v32 = vpop.f32.mrf.mxu1  ;;  %v1403_v33 = vsel %vm1395_vm4, %v1307_v23, %v1399_v27  ;;  %v5689_v27 = vld [vmem:[#allocation6 + $0x2e8] ss:$16 sps:$4 sm:$0xff]  }
 0x1fd   :  { %v6430_v37 = vpack.c.bf16 %v1403_v33, %v1403_v33  ;;  %v5692_v30 = vld [vmem:[#allocation6 + $0x2c8] ss:$16 sps:$4 sm:$0xff]   ;;  %v5700_v33 = vld [vmem:[#allocation6 + $0x28c] ss:$16 sps:$4 sm:$0xff]  }
 0x1fe   :  { %v1404_v34 = vsel %vm1396_vm5, %v1309_v28, %v1400_v31  ;;  %v5697_v31 = vld [vmem:[#allocation6 + $0x2ac] ss:$16 sps:$4 sm:$0xff]   ;;  %v5695_v32 = vld [vmem:[#allocation6 + $0x2a8] ss:$16 sps:$4 sm:$0xff]  }
 0x1ff   :  { %v1537_v35 = vpack.c.bf16 %v1404_v34, %v1404_v34  ;;  %v5737_v34 = vld [vmem:[#allocation7 + $0xe0] ss:$16 sps:$4 sm:$0xff]  }
 0x201   :  { %2233 = vmatprep.mubr.bf16.mxu0 %v1537_v35 }
 0x202   :  { %2234 = vmatmul.mubr.bf16.vlgmr.msra.gmra.mxu0 %v6430_v37 }
 0x203   :  { %2284 = vmatpush1.bf16.msra.mxu0 %v5596_v36  ;;  %2315 = vmatprep.mubr.bf16.mxu0 %v1537_v35  ;;  %v5739_v35 = vld [vmem:[#allocation7 + $0xe4] ss:$16 sps:$4 sm:$0xff]  }
 0x204   :  { %2285 = vmatprep.subr.bf16.mxu0 %v5604_v38  ;;  %v5742_v36 = vld [vmem:[#allocation7 + $0xc4] ss:$16 sps:$4 sm:$0xff]   ;;  %v5698_v38 = vld [vmem:[#allocation6 + $0x288] ss:$16 sps:$4 sm:$0xff]  }
 0x207   :  { %2286 = vmatpush1.bf16.msra.mxu0 %v5602_v39  ;;  %v5740_v39 = vld [vmem:[#allocation7 + $0xc0] ss:$16 sps:$4 sm:$0xff]  }
 0x208   :  { %2287 = vmatprep.subr.bf16.mxu0 %v5610_v44  ;;  %v5703_v44 = vld [vmem:[#allocation6 + $0x26c] ss:$16 sps:$4 sm:$0xff]  }
 0x20b   :  { %2288 = vmatpush1.bf16.msra.mxu0 %v5608_v45  ;;  %v5701_v45 = vld [vmem:[#allocation6 + $0x268] ss:$16 sps:$4 sm:$0xff]  }
 0x20c   :  { %2289 = vmatprep.subr.bf16.mxu0 %v5616_v46  ;;  %v5743_v46 = vld [vmem:[#allocation7 + $0xa0] ss:$16 sps:$4 sm:$0xff]  }
 0x20f   :  { %2290 = vmatpush1.bf16.msra.mxu0 %v5614_v47  ;;  %v5706_v47 = vld [vmem:[#allocation6 + $0x24c] ss:$16 sps:$4 sm:$0xff]  }
 0x210   :  { %2291 = vmatprep.subr.bf16.mxu0 %v5622_v48  ;;  %v5748_v48 = vld [vmem:[#allocation7 + $0x84] ss:$16 sps:$4 sm:$0xff]  }
 0x213   :  { %2292 = vmatpush1.bf16.msra.mxu0 %v5620_v49  ;;  %v5704_v49 = vld [vmem:[#allocation6 + $0x248] ss:$16 sps:$4 sm:$0xff]  }
 0x214   :  { %2293 = vmatprep.subr.bf16.mxu0 %v5628_v50  ;;  %v5746_v50 = vld [vmem:[#allocation7 + $0x80] ss:$16 sps:$4 sm:$0xff]  }
 0x217   :  { %2294 = vmatpush1.bf16.msra.mxu0 %v5626_v51  ;;  %v5709_v51 = vld [vmem:[#allocation6 + $0x22c] ss:$16 sps:$4 sm:$0xff]  }
 0x218   :  { %2295 = vmatprep.subr.bf16.mxu0 %v5634_v52  ;;  %v5751_v52 = vld [vmem:[#allocation7 + $0x64] ss:$16 sps:$4 sm:$0xff]  }
 0x21b   :  { %2296 = vmatpush1.bf16.msra.mxu0 %v5632_v53  ;;  %v5707_v53 = vld [vmem:[#allocation6 + $0x228] ss:$16 sps:$4 sm:$0xff]  }
 0x21c   :  { %2297 = vmatprep.subr.bf16.mxu0 %v5640_v54  ;;  %v5749_v54 = vld [vmem:[#allocation7 + $0x60] ss:$16 sps:$4 sm:$0xff]  }
 0x21f   :  { %2298 = vmatpush1.bf16.msra.mxu0 %v5638_v55  ;;  %v5712_v55 = vld [vmem:[#allocation6 + $0x20c] ss:$16 sps:$4 sm:$0xff]  }
 0x220   :  { %2299 = vmatprep.subr.bf16.mxu0 %v5646_v56  ;;  %v5754_v56 = vld [vmem:[#allocation7 + $0x44] ss:$16 sps:$4 sm:$0xff]  }
 0x223   :  { %2300 = vmatpush2.bf16.msra.mxu0 %v5644_v57  ;;  %v5710_v57 = vld [vmem:[#allocation6 + $0x208] ss:$16 sps:$4 sm:$0xff]  }
 0x224   :  { %2301 = vmatprep.subr.bf16.mxu0 %v5652_v58  ;;  %v5752_v58 = vld [vmem:[#allocation7 + $0x40] ss:$16 sps:$4 sm:$0xff]  }
 0x227   :  { %2302 = vmatpush2.bf16.msra.mxu0 %v5650_v59  ;;  %v5715_v59 = vld [vmem:[#allocation6 + $0x3ec] ss:$16 sps:$4 sm:$0xff]  }
 0x228   :  { %2303 = vmatprep.subr.bf16.mxu0 %v5658_v60  ;;  %v5757_v60 = vld [vmem:[#allocation7 + $0x24] ss:$16 sps:$4 sm:$0xff]  }
 0x22b   :  { %2304 = vmatpush2.bf16.msra.mxu0 %v5656_v61  ;;  %v5713_v61 = vld [vmem:[#allocation6 + $0x3e8] ss:$16 sps:$4 sm:$0xff]  }
 0x22c   :  { %2305 = vmatprep.subr.bf16.mxu0 %v5664_v62  ;;  %v5755_v62 = vld [vmem:[#allocation7 + $0x20] ss:$16 sps:$4 sm:$0xff]  }
 0x22f   :  { %2306 = vmatpush2.bf16.msra.mxu0 %v5662_v63  ;;  %v5718_v63 = vld [vmem:[#allocation6 + $0x3cc] ss:$16 sps:$4 sm:$0xff]  }
 0x230   :  { %2307 = vmatprep.subr.bf16.mxu0 %v5670_v0  ;;  %v5760_v0 = vld [vmem:[#allocation7 + $0x4] ss:$16 sps:$4 sm:$0xff]  }
 0x233   :  { %2308 = vmatpush2.bf16.msra.mxu0 %v5668_v1  ;;  %v5716_v1 = vld [vmem:[#allocation6 + $0x3c8] ss:$16 sps:$4 sm:$0xff]  }
 0x234   :  { %2309 = vmatprep.subr.bf16.mxu0 %v5676_v2  ;;  %v5758_v2 = vld [vmem:[#allocation7] ss:$16 sps:$4 sm:$0xff]  }
 0x235   :  { %v1347_v7 = vpop.f32.mrf.mxu0 }
 0x236   :  { %v1348_v9 = vadd.f32 %v1347_v7, %v582_v3  ;;  %v1388_v10 = vpop.f32.mrf.mxu1  ;;  %v5721_v3 = vld [vmem:[#allocation6 + $0x3ac] ss:$16 sps:$4 sm:$0xff]  }
 0x237   :  { %v1349_v12 = vpop.f32.mrf.mxu0  ;;  %2310 = vmatpush2.bf16.msra.mxu0 %v5674_v4  ;;  %v5763_v4 = vld [vmem:[#allocation7 + $0x1e4] ss:$16 sps:$4 sm:$0xff]   ;;  %v5724_v7 = vld [vmem:[#allocation6 + $0x38c] ss:$16 sps:$4 sm:$0xff]  }
 0x238   :  { %v1389_v14 = vadd.f32 %v1388_v10, %v1348_v9  ;;  %v1350_v15 = vadd.f32 %v1349_v12, %v586_v5  ;;  %v1390_v16 = vpop.f32.mrf.mxu1  ;;  %2311 = vmatprep.subr.bf16.mxu0 %v5682_v6  ;;  %v5719_v5 = vld [vmem:[#allocation6 + $0x3a8] ss:$16 sps:$4 sm:$0xff]   ;;  %v5761_v6 = vld [vmem:[#allocation7 + $0x1e0] ss:$16 sps:$4 sm:$0xff]   ;;  %v5766_v9 = vld [vmem:[#allocation7 + $0x1c4] ss:$16 sps:$4 sm:$0xff]  }
 0x239   :  { %v1351_v19 = vpop.f32.mrf.mxu0  ;;  %v5722_v10 = vld [vmem:[#allocation6 + $0x388] ss:$16 sps:$4 sm:$0xff]   ;;  %v5764_v12 = vld [vmem:[#allocation7 + $0x1c0] ss:$16 sps:$4 sm:$0xff]  }
 0x23a   :  { %vm1397_vm6 = vcmp.gt.f32.partialorder %v1389_v14, 0.0  ;;  %v1401_v20 = vmul.f32 0.2, %v1389_v14  ;;  %v1391_v21 = vadd.f32 %v1390_v16, %v1350_v15  ;;  %v1392_v22 = vpop.f32.mrf.mxu1  ;;  %v5725_v15 = vld [vmem:[#allocation6 + $0x368] ss:$16 sps:$4 sm:$0xff]  }
 0x23b   :  { %v1352_v8 = vpop.f32.mrf.mxu0  ;;  %2312 = vmatpush2.bf16.msra.mxu0 %v5680_v13  ;;  %v5727_v13 = vld [vmem:[#allocation6 + $0x36c] ss:$16 sps:$4 sm:$0xff]   ;;  %v5767_v16 = vld [vmem:[#allocation7 + $0x1a0] ss:$16 sps:$4 sm:$0xff]   ;;  %v5772_v19 = vld [vmem:[#allocation7 + $0x184] ss:$16 sps:$4 sm:$0xff]  }
 0x23c   :  { %vm1398_vm7 = vcmp.gt.f32.partialorder %v1391_v21, 0.0  ;;  %v1402_v11 = vmul.f32 0.2, %v1391_v21  ;;  %v1393_v23 = vpop.f32.mrf.mxu1  ;;  %2313 = vmatprep.subr.bf16.mxu0 %v5688_v17  ;;  %v1405_v24 = vsel %vm1397_vm6, %v1389_v14, %v1401_v20  ;;  %v5769_v14 = vld [vmem:[#allocation7 + $0x1a4] ss:$16 sps:$4 sm:$0xff]  }
 0x23d   :  { %v6437_v28 = vpack.c.bf16 %v1405_v24, %v1405_v24  ;;  %v5730_v17 = vld [vmem:[#allocation6 + $0x34c] ss:$16 sps:$4 sm:$0xff]   ;;  %v5728_v20 = vld [vmem:[#allocation6 + $0x348] ss:$16 sps:$4 sm:$0xff]   ;;  %v5775_v8 = vld [vmem:[#allocation7 + $0x164] ss:$16 sps:$4 sm:$0xff]  }
 0x23e   :  { %v1406_v25 = vsel %vm1398_vm7, %v1391_v21, %v1402_v11  ;;  %v5770_v21 = vld [vmem:[#allocation7 + $0x180] ss:$16 sps:$4 sm:$0xff]   ;;  %v5733_v22 = vld [vmem:[#allocation6 + $0x32c] ss:$16 sps:$4 sm:$0xff]   ;;  %v5778_v24 = vld [vmem:[#allocation7 + $0x144] ss:$16 sps:$4 sm:$0xff]  }
 0x23f   :  { %2314 = vmatpush2.bf16.msra.mxu0 %v5686_v18  ;;  %v1539_v26 = vpack.c.bf16 %v1406_v25, %v1406_v25  ;;  %v5731_v18 = vld [vmem:[#allocation6 + $0x328] ss:$16 sps:$4 sm:$0xff]   ;;  %v5773_v11 = vld [vmem:[#allocation7 + $0x160] ss:$16 sps:$4 sm:$0xff]   ;;  %v5736_v23 = vld [vmem:[#allocation6 + $0x30c] ss:$16 sps:$4 sm:$0xff]  }
 0x240   :  { %3171 = vmatprep.subr.bf16.mxu0 %v5739_v35  ;;  %v5734_v25 = vld [vmem:[#allocation6 + $0x308] ss:$16 sps:$4 sm:$0xff]   ;;  %v5791_v35 = vld [vmem:[#allocation7 + $0x2c0] ss:$16 sps:$4 sm:$0xff]  }
 0x241   :  { %2274 = vmatprep.mubr.bf16.mxu1 %v1539_v26 }
 0x242   :  { %2275 = vmatmul.mubr.bf16.vlgmr.msra.gmra.mxu1 %v6437_v28  ;;  %2316 = vmatmul.mubr.bf16.vlgmr.msra.gmra.mxu0 %v6430_v37  ;;  %v5745_v37 = vld [vmem:[#allocation7 + $0xa4] ss:$16 sps:$4 sm:$0xff]  }
 0x243   :  { %2325 = vmatpush1.bf16.msra.mxu1 %v5689_v27  ;;  %2356 = vmatprep.mubr.bf16.mxu1 %v1539_v26  ;;  %v5776_v26 = vld [vmem:[#allocation7 + $0x140] ss:$16 sps:$4 sm:$0xff]   ;;  %v5781_v27 = vld [vmem:[#allocation7 + $0x124] ss:$16 sps:$4 sm:$0xff]  }
 0x244   :  { %2326 = vmatprep.subr.bf16.mxu1 %v5694_v29  ;;  %3172 = vmatpush1.bf16.msra.mxu0 %v5737_v34  ;;  %v5779_v29 = vld [vmem:[#allocation7 + $0x120] ss:$16 sps:$4 sm:$0xff]   ;;  %v5790_v34 = vld [vmem:[#allocation7 + $0xec] ss:$16 sps:$4 sm:$0xff]  }
 0x245   :  { %3173 = vmatprep.subr.bf16.mxu0 %v5742_v36  ;;  %v5793_v36 = vld [vmem:[#allocation7 + $0x2c4] ss:$16 sps:$4 sm:$0xff]  }
 0x247   :  { %2327 = vmatpush1.bf16.msra.mxu1 %v5692_v30  ;;  %v5784_v30 = vld [vmem:[#allocation7 + $0x104] ss:$16 sps:$4 sm:$0xff]  }
 0x248   :  { %2328 = vmatprep.subr.bf16.mxu1 %v5697_v31  ;;  %3174 = vmatpush1.bf16.msra.mxu0 %v5740_v39  ;;  %v5782_v31 = vld [vmem:[#allocation7 + $0x100] ss:$16 sps:$4 sm:$0xff]  }
 0x249   :  { %3175 = vmatprep.subr.bf16.mxu0 %v5745_v37  ;;  %v5803_v39 = vld [vmem:[#allocation7 + $0x280] ss:$16 sps:$4 sm:$0xff]  }
 0x24a   :  { %v5809_v37 = vld [vmem:[#allocation7 + $0x260] ss:$16 sps:$4 sm:$0xff]  }
 0x24b   :  { %2329 = vmatpush1.bf16.msra.mxu1 %v5695_v32  ;;  %v5785_v32 = vld [vmem:[#allocation7 + $0x2e0] ss:$16 sps:$4 sm:$0xff]  }
 0x24c   :  { %2330 = vmatprep.subr.bf16.mxu1 %v5700_v33  ;;  %3176 = vmatpush1.bf16.msra.mxu0 %v5743_v46  ;;  %v5787_v33 = vld [vmem:[#allocation7 + $0x2e4] ss:$16 sps:$4 sm:$0xff]   ;;  %v5815_v46 = vld [vmem:[#allocation7 + $0x240] ss:$16 sps:$4 sm:$0xff]  }
 0x24d   :  { %3177 = vmatprep.subr.bf16.mxu0 %v5748_v48  ;;  %v5821_v48 = vld [vmem:[#allocation7 + $0x220] ss:$16 sps:$4 sm:$0xff]  }
 0x24f   :  { %2331 = vmatpush1.bf16.msra.mxu1 %v5698_v38  ;;  %v5797_v38 = vld [vmem:[#allocation7 + $0x2a0] ss:$16 sps:$4 sm:$0xff]  }
 0x250   :  { %2332 = vmatprep.subr.bf16.mxu1 %v5703_v44  ;;  %3178 = vmatpush1.bf16.msra.mxu0 %v5746_v50  ;;  %v5805_v44 = vld [vmem:[#allocation7 + $0x284] ss:$16 sps:$4 sm:$0xff]   ;;  %v5827_v50 = vld [vmem:[#allocation7 + $0x200] ss:$16 sps:$4 sm:$0xff]  }
 0x251   :  { %3179 = vmatprep.subr.bf16.mxu0 %v5751_v52  ;;  %v5833_v52 = vld [vmem:[#allocation7 + $0x3e0] ss:$16 sps:$4 sm:$0xff]  }
 0x253   :  { %2333 = vmatpush1.bf16.msra.mxu1 %v5701_v45  ;;  %v5811_v45 = vld [vmem:[#allocation7 + $0x264] ss:$16 sps:$4 sm:$0xff]  }
 0x254   :  { %2334 = vmatprep.subr.bf16.mxu1 %v5706_v47  ;;  %3180 = vmatpush1.bf16.msra.mxu0 %v5749_v54  ;;  %v5817_v47 = vld [vmem:[#allocation7 + $0x244] ss:$16 sps:$4 sm:$0xff]   ;;  %v5839_v54 = vld [vmem:[#allocation7 + $0x3c0] ss:$16 sps:$4 sm:$0xff]  }
 0x255   :  { %3181 = vmatprep.subr.bf16.mxu0 %v5754_v56  ;;  %v5845_v56 = vld [vmem:[#allocation7 + $0x3a0] ss:$16 sps:$4 sm:$0xff]  }
 0x257   :  { %2335 = vmatpush1.bf16.msra.mxu1 %v5704_v49  ;;  %v5823_v49 = vld [vmem:[#allocation7 + $0x224] ss:$16 sps:$4 sm:$0xff]  }
 0x258   :  { %2336 = vmatprep.subr.bf16.mxu1 %v5709_v51  ;;  %3182 = vmatpush1.bf16.msra.mxu0 %v5752_v58  ;;  %v5829_v51 = vld [vmem:[#allocation7 + $0x204] ss:$16 sps:$4 sm:$0xff]   ;;  %v5851_v58 = vld [vmem:[#allocation7 + $0x380] ss:$16 sps:$4 sm:$0xff]  }
 0x259   :  { %3183 = vmatprep.subr.bf16.mxu0 %v5757_v60  ;;  %v5857_v60 = vld [vmem:[#allocation7 + $0x360] ss:$16 sps:$4 sm:$0xff]  }
 0x25b   :  { %2337 = vmatpush1.bf16.msra.mxu1 %v5707_v53  ;;  %v5835_v53 = vld [vmem:[#allocation7 + $0x3e4] ss:$16 sps:$4 sm:$0xff]  }
 0x25c   :  { %2338 = vmatprep.subr.bf16.mxu1 %v5712_v55  ;;  %3184 = vmatpush1.bf16.msra.mxu0 %v5755_v62  ;;  %v5841_v55 = vld [vmem:[#allocation7 + $0x3c4] ss:$16 sps:$4 sm:$0xff]   ;;  %v5863_v62 = vld [vmem:[#allocation7 + $0x340] ss:$16 sps:$4 sm:$0xff]  }
 0x25d   :  { %3185 = vmatprep.subr.bf16.mxu0 %v5760_v0 }
 0x25f   :  { %2339 = vmatpush1.bf16.msra.mxu1 %v5710_v57  ;;  %v5847_v57 = vld [vmem:[#allocation7 + $0x3a4] ss:$16 sps:$4 sm:$0xff]  }
 0x260   :  { %2340 = vmatprep.subr.bf16.mxu1 %v5715_v59  ;;  %3186 = vmatpush1.bf16.msra.mxu0 %v5758_v2  ;;  %v5853_v59 = vld [vmem:[#allocation7 + $0x384] ss:$16 sps:$4 sm:$0xff]   ;;  %v5869_v2 = vld [vmem:[#allocation7 + $0x320] ss:$16 sps:$4 sm:$0xff]  }
 0x261   :  { %3187 = vmatprep.subr.bf16.mxu0 %v5763_v4 }
 0x263   :  { %2341 = vmatpush2.bf16.msra.mxu1 %v5713_v61  ;;  %v5859_v61 = vld [vmem:[#allocation7 + $0x364] ss:$16 sps:$4 sm:$0xff]  }
 0x264   :  { %2342 = vmatprep.subr.bf16.mxu1 %v5718_v63  ;;  %3188 = vmatpush2.bf16.msra.mxu0 %v5761_v6  ;;  %v5865_v63 = vld [vmem:[#allocation7 + $0x344] ss:$16 sps:$4 sm:$0xff]   ;;  %v5875_v6 = vld [vmem:[#allocation7 + $0x300] ss:$16 sps:$4 sm:$0xff]  }
 0x265   :  { %3189 = vmatprep.subr.bf16.mxu0 %v5766_v9  ;;  %v5883_v9 = vld [vmem:[#allocation7 + $0x2ec] ss:$16 sps:$4 sm:$0xff]  }
 0x267   :  { %2343 = vmatpush2.bf16.msra.mxu1 %v5716_v1  ;;  %v5871_v1 = vld [vmem:[#allocation7 + $0x324] ss:$16 sps:$4 sm:$0xff]  }
 0x268   :  { %2344 = vmatprep.subr.bf16.mxu1 %v5721_v3  ;;  %3190 = vmatpush2.bf16.msra.mxu0 %v5764_v12 }
 0x269   :  { %3191 = vmatprep.subr.bf16.mxu0 %v5769_v14 }
 0x26b   :  { %2345 = vmatpush2.bf16.msra.mxu1 %v5719_v5  ;;  %v5877_v5 = vld [vmem:[#allocation7 + $0x304] ss:$16 sps:$4 sm:$0xff]  }
 0x26c   :  { %2346 = vmatprep.subr.bf16.mxu1 %v5724_v7  ;;  %3192 = vmatpush2.bf16.msra.mxu0 %v5767_v16 }
 0x26d   :  { %3193 = vmatprep.subr.bf16.mxu0 %v5772_v19 }
 0x26f   :  { %2347 = vmatpush2.bf16.msra.mxu1 %v5722_v10  ;;  %v6445_v10 = vld [vmem:[%s6515_s6] sm:$0xf] }
 0x270   :  { %2348 = vmatprep.subr.bf16.mxu1 %v5727_v13  ;;  %3194 = vmatpush2.bf16.msra.mxu0 %v5770_v21  ;;  %v1544_v12 = vrot.slane %v6445_v10, %v6401_v40  ;;  %v1548_v13 = vrot.slane %v6445_v10, %v6405_v42 }
 0x271   :  { %3195 = vmatprep.subr.bf16.mxu0 %v5775_v8 }
 0x273   :  { %2349 = vmatpush2.bf16.msra.mxu1 %v5725_v15 }
 0x274   :  { %2350 = vmatprep.subr.bf16.mxu1 %v5730_v17  ;;  %3196 = vmatpush2.bf16.msra.mxu0 %v5773_v11 }
 0x275   :  { %3197 = vmatprep.subr.bf16.mxu0 %v5778_v24 }
 0x277   :  { %2351 = vmatpush2.bf16.msra.mxu1 %v5728_v20 }
 0x278   :  { %2352 = vmatprep.subr.bf16.mxu1 %v5733_v22  ;;  %3198 = vmatpush2.bf16.msra.mxu0 %v5776_v26 }
 0x279   :  { %3199 = vmatprep.subr.bf16.mxu0 %v5781_v27 }
 0x27b   :  { %2353 = vmatpush2.bf16.msra.mxu1 %v5731_v18 }
 0x27c   :  { %2354 = vmatprep.subr.bf16.mxu1 %v5736_v23  ;;  %3200 = vmatpush2.bf16.msra.mxu0 %v5779_v29 }
 0x27d   :  { %3201 = vmatprep.subr.bf16.mxu0 %v5784_v30  ;;  %v5788_v30 = vld [vmem:[#allocation7 + $0xe8] ss:$16 sps:$4 sm:$0xff]  }
 0x27f   :  { %2355 = vmatpush2.bf16.msra.mxu1 %v5734_v25 }
 0x280   :  { %3202 = vmatpush2.bf16.msra.mxu0 %v5782_v31  ;;  %3212 = vmatprep.subr.bf16.mxu1 %v5787_v33  ;;  %v5794_v33 = vld [vmem:[#allocation7 + $0xc8] ss:$16 sps:$4 sm:$0xff]  }
 0x281   :  { %3253 = vmatprep.subr.bf16.mxu0 %v5790_v34  ;;  %v5802_v34 = vld [vmem:[#allocation7 + $0xac] ss:$16 sps:$4 sm:$0xff]  }
 0x282   :  { %2357 = vmatmul.mubr.bf16.vlgmr.msra.gmra.mxu1 %v6437_v28  ;;  %v5799_v28 = vld [vmem:[#allocation7 + $0x2a4] ss:$16 sps:$4 sm:$0xff]  }
 0x283   :  { %3213 = vmatpush1.bf16.msra.mxu1 %v5785_v32  ;;  %v5796_v32 = vld [vmem:[#allocation7 + $0xcc] ss:$16 sps:$4 sm:$0xff]  }
 0x284   :  { %3214 = vmatprep.subr.bf16.mxu1 %v5793_v36  ;;  %v5808_v36 = vld [vmem:[#allocation7 + $0x8c] ss:$16 sps:$4 sm:$0xff]  }
 0x287   :  { %3215 = vmatpush1.bf16.msra.mxu1 %v5791_v35  ;;  %v5800_v35 = vld [vmem:[#allocation7 + $0xa8] ss:$16 sps:$4 sm:$0xff]  }
 0x288   :  { %3216 = vmatprep.subr.bf16.mxu1 %v5799_v28  ;;  %v5814_v28 = vld [vmem:[#allocation7 + $0x6c] ss:$16 sps:$4 sm:$0xff]  }
 0x28b   :  { %3217 = vmatpush1.bf16.msra.mxu1 %v5797_v38  ;;  %v5806_v38 = vld [vmem:[#allocation7 + $0x88] ss:$16 sps:$4 sm:$0xff]  }
 0x28c   :  { %3218 = vmatprep.subr.bf16.mxu1 %v5805_v44  ;;  %v5820_v44 = vld [vmem:[#allocation7 + $0x4c] ss:$16 sps:$4 sm:$0xff]  }
 0x28f   :  { %3219 = vmatpush1.bf16.msra.mxu1 %v5803_v39  ;;  %v5812_v39 = vld [vmem:[#allocation7 + $0x68] ss:$16 sps:$4 sm:$0xff]  }
 0x290   :  { %3220 = vmatprep.subr.bf16.mxu1 %v5811_v45  ;;  %v5826_v45 = vld [vmem:[#allocation7 + $0x2c] ss:$16 sps:$4 sm:$0xff]  }
 0x293   :  { %3221 = vmatpush1.bf16.msra.mxu1 %v5809_v37  ;;  %v5818_v37 = vld [vmem:[#allocation7 + $0x48] ss:$16 sps:$4 sm:$0xff]  }
 0x294   :  { %3222 = vmatprep.subr.bf16.mxu1 %v5817_v47  ;;  %v5832_v47 = vld [vmem:[#allocation7 + $0xc] ss:$16 sps:$4 sm:$0xff]  }
 0x297   :  { %3223 = vmatpush1.bf16.msra.mxu1 %v5815_v46  ;;  %v5824_v46 = vld [vmem:[#allocation7 + $0x28] ss:$16 sps:$4 sm:$0xff]  }
 0x298   :  { %3224 = vmatprep.subr.bf16.mxu1 %v5823_v49  ;;  %v5838_v49 = vld [vmem:[#allocation7 + $0x1ec] ss:$16 sps:$4 sm:$0xff]  }
 0x29b   :  { %3225 = vmatpush1.bf16.msra.mxu1 %v5821_v48  ;;  %v5830_v48 = vld [vmem:[#allocation7 + $0x8] ss:$16 sps:$4 sm:$0xff]  }
 0x29c   :  { %3226 = vmatprep.subr.bf16.mxu1 %v5829_v51  ;;  %v5844_v51 = vld [vmem:[#allocation7 + $0x1cc] ss:$16 sps:$4 sm:$0xff]  }
 0x29f   :  { %3227 = vmatpush1.bf16.msra.mxu1 %v5827_v50  ;;  %v5836_v50 = vld [vmem:[#allocation7 + $0x1e8] ss:$16 sps:$4 sm:$0xff]  }
 0x2a0   :  { %3228 = vmatprep.subr.bf16.mxu1 %v5835_v53  ;;  %v5850_v53 = vld [vmem:[#allocation7 + $0x1ac] ss:$16 sps:$4 sm:$0xff]  }
 0x2a3   :  { %3229 = vmatpush2.bf16.msra.mxu1 %v5833_v52  ;;  %v5842_v52 = vld [vmem:[#allocation7 + $0x1c8] ss:$16 sps:$4 sm:$0xff]  }
 0x2a4   :  { %3230 = vmatprep.subr.bf16.mxu1 %v5841_v55  ;;  %v5856_v55 = vld [vmem:[#allocation7 + $0x18c] ss:$16 sps:$4 sm:$0xff]  }
 0x2a7   :  { %3231 = vmatpush2.bf16.msra.mxu1 %v5839_v54  ;;  %v5848_v54 = vld [vmem:[#allocation7 + $0x1a8] ss:$16 sps:$4 sm:$0xff]  }
 0x2a8   :  { %3232 = vmatprep.subr.bf16.mxu1 %v5847_v57  ;;  %v5862_v57 = vld [vmem:[#allocation7 + $0x16c] ss:$16 sps:$4 sm:$0xff]  }
 0x2ab   :  { %3233 = vmatpush2.bf16.msra.mxu1 %v5845_v56  ;;  %v5854_v56 = vld [vmem:[#allocation7 + $0x188] ss:$16 sps:$4 sm:$0xff]  }
 0x2ac   :  { %3234 = vmatprep.subr.bf16.mxu1 %v5853_v59  ;;  %v5868_v59 = vld [vmem:[#allocation7 + $0x14c] ss:$16 sps:$4 sm:$0xff]  }
 0x2af   :  { %3235 = vmatpush2.bf16.msra.mxu1 %v5851_v58  ;;  %v5860_v58 = vld [vmem:[#allocation7 + $0x168] ss:$16 sps:$4 sm:$0xff]  }
 0x2b0   :  { %3236 = vmatprep.subr.bf16.mxu1 %v5859_v61  ;;  %v5866_v61 = vld [vmem:[#allocation7 + $0x148] ss:$16 sps:$4 sm:$0xff]  }
 0x2b3   :  { %3237 = vmatpush2.bf16.msra.mxu1 %v5857_v60  ;;  %v1552_v60 = vrot.slane %v6445_v10, %v6403_v41 }
 0x2b4   :  { %3238 = vmatprep.subr.bf16.mxu1 %v5865_v63  ;;  %v5874_v63 = vld [vmem:[#allocation7 + $0x12c] ss:$16 sps:$4 sm:$0xff]  }
 0x2b7   :  { %3239 = vmatpush2.bf16.msra.mxu1 %v5863_v62  ;;  %v1556_v62 = vrot.slane %v6445_v10, %v6407_v43 }
 0x2b8   :  { %3240 = vmatprep.subr.bf16.mxu1 %v5871_v1 }
 0x2bb   :  { %3241 = vmatpush2.bf16.msra.mxu1 %v5869_v2  ;;  %v5872_v2 = vld [vmem:[#allocation7 + $0x128] ss:$16 sps:$4 sm:$0xff]  }
 0x2bc   :  { %3242 = vmatprep.subr.bf16.mxu1 %v5877_v5  ;;  %v5880_v5 = vld [vmem:[#allocation7 + $0x10c] ss:$16 sps:$4 sm:$0xff]  }
 0x2bf   :  { %3243 = vmatpush2.bf16.msra.mxu1 %v5875_v6 }
 0x2c0   :  { %3294 = vmatprep.subr.bf16.mxu1 %v5883_v9 }
 0x2c2   :  { %v2235_v0 = vpop.f32.mrf.mxu0 }
 0x2c3   :  { %v2236_v14 = vadd.f32 %v2235_v0, %v1544_v12 }
 0x2c4   :  { %v2237_v3 = vpop.f32.mrf.mxu0 }
 0x2c5   :  { %v2238_v17 = vadd.f32 %v2237_v3, %v1548_v13  ;;  %v5878_v13 = vld [vmem:[#allocation7 + $0x108] ss:$16 sps:$4 sm:$0xff]  }
 0x2c6   :  { %v2239_v4 = vpop.f32.mrf.mxu0 }
 0x2c8   :  { %v2240_v7 = vpop.f32.mrf.mxu0 }
 0x302   :  { %v2276_v15 = vpop.f32.mrf.mxu1  ;;  %v6451_v16 = vpop.f32.mrf.mxu0 }
 0x303   :  { %v2277_v19 = vadd.f32 %v2276_v15, %v2236_v14  ;;  %v2318_v0 = vadd.f32 %v6451_v16, %v1552_v60  ;;  %v5916_v60 = vld [vmem:[#allocation7 + $0x38c] ss:$16 sps:$4 sm:$0xff]  }
 0x304   :  { %v2278_v20 = vpop.f32.mrf.mxu1  ;;  %v6453_v21 = vpop.f32.mrf.mxu0 }
 0x305   :  { %vm2365_vm8 = vcmp.gt.f32.partialorder %v2277_v19, 0.0  ;;  %v2369_v22 = vmul.f32 0.2, %v2277_v19  ;;  %v2279_v8 = vadd.f32 %v2278_v20, %v2238_v17  ;;  %v2320_v3 = vadd.f32 %v6453_v21, %v1556_v62  ;;  %v5886_v21 = vld [vmem:[#allocation7 + $0x2cc] ss:$16 sps:$4 sm:$0xff]  }
 0x306   :  { %v2280_v18 = vpop.f32.mrf.mxu1  ;;  %v2321_v11 = vpop.f32.mrf.mxu0  ;;  %v5914_v62 = vld [vmem:[#allocation7 + $0x388] ss:$16 sps:$4 sm:$0xff]  }
 0x307   :  { %vm2366_vm9 = vcmp.gt.f32.partialorder %v2279_v8, 0.0  ;;  %v2370_v23 = vmul.f32 0.2, %v2279_v8  ;;  %v2373_v24 = vsel %vm2365_vm8, %v2277_v19, %v2369_v22  ;;  %v5881_v19 = vld [vmem:[#allocation7 + $0x2e8] ss:$16 sps:$4 sm:$0xff]  }
 0x308   :  { %v2281_v25 = vpop.f32.mrf.mxu1  ;;  %v2322_v26 = vpop.f32.mrf.mxu0  ;;  %v6455_v31 = vpack.c.bf16 %v2373_v24, %v2373_v24  ;;  %v5884_v22 = vld [vmem:[#allocation7 + $0x2c8] ss:$16 sps:$4 sm:$0xff]   ;;  %v5892_v11 = vld [vmem:[#allocation7 + $0x28c] ss:$16 sps:$4 sm:$0xff]   ;;  %v5931_v24 = vld [vmem:[#allocation9 + $0xe4] ss:$16 sps:$4 sm:$0xff]  }
 0x309   :  { %v2374_v27 = vsel %vm2366_vm9, %v2279_v8, %v2370_v23  ;;  %v5889_v8 = vld [vmem:[#allocation7 + $0x2ac] ss:$16 sps:$4 sm:$0xff]   ;;  %v5887_v18 = vld [vmem:[#allocation7 + $0x2a8] ss:$16 sps:$4 sm:$0xff]   ;;  %v5929_v23 = vld [vmem:[#allocation9 + $0xe0] ss:$16 sps:$4 sm:$0xff]  }
 0x30a   :  { %v2507_v29 = vpack.c.bf16 %v2374_v27, %v2374_v27  ;;  %v5934_v25 = vld [vmem:[#allocation9 + $0xc4] ss:$16 sps:$4 sm:$0xff]   ;;  %v5890_v26 = vld [vmem:[#allocation7 + $0x288] ss:$16 sps:$4 sm:$0xff]   ;;  %v5932_v27 = vld [vmem:[#allocation9 + $0xc0] ss:$16 sps:$4 sm:$0xff]  }
 0x30c   :  { %3203 = vmatprep.mubr.bf16.mxu0 %v2507_v29 }
 0x30d   :  { %3204 = vmatmul.mubr.bf16.vlgmr.msra.gmra.mxu0 %v6455_v31 }
 0x30e   :  { %3254 = vmatpush1.bf16.msra.mxu0 %v5788_v30  ;;  %3285 = vmatprep.mubr.bf16.mxu0 %v2507_v29  ;;  %v5895_v29 = vld [vmem:[#allocation7 + $0x26c] ss:$16 sps:$4 sm:$0xff]   ;;  %v5937_v30 = vld [vmem:[#allocation9 + $0xa4] ss:$16 sps:$4 sm:$0xff]  }
 0x30f   :  { %3255 = vmatprep.subr.bf16.mxu0 %v5796_v32  ;;  %v5935_v32 = vld [vmem:[#allocation9 + $0xa0] ss:$16 sps:$4 sm:$0xff]  }
 0x312   :  { %3256 = vmatpush1.bf16.msra.mxu0 %v5794_v33  ;;  %v5898_v33 = vld [vmem:[#allocation7 + $0x24c] ss:$16 sps:$4 sm:$0xff]  }
 0x313   :  { %3257 = vmatprep.subr.bf16.mxu0 %v5802_v34  ;;  %v5940_v34 = vld [vmem:[#allocation9 + $0x84] ss:$16 sps:$4 sm:$0xff]  }
 0x316   :  { %3258 = vmatpush1.bf16.msra.mxu0 %v5800_v35  ;;  %v5896_v35 = vld [vmem:[#allocation7 + $0x248] ss:$16 sps:$4 sm:$0xff]  }
 0x317   :  { %3259 = vmatprep.subr.bf16.mxu0 %v5808_v36  ;;  %v5938_v36 = vld [vmem:[#allocation9 + $0x80] ss:$16 sps:$4 sm:$0xff]  }
 0x31a   :  { %3260 = vmatpush1.bf16.msra.mxu0 %v5806_v38  ;;  %v5901_v38 = vld [vmem:[#allocation7 + $0x22c] ss:$16 sps:$4 sm:$0xff]  }
 0x31b   :  { %3261 = vmatprep.subr.bf16.mxu0 %v5814_v28  ;;  %v5943_v28 = vld [vmem:[#allocation9 + $0x64] ss:$16 sps:$4 sm:$0xff]  }
 0x31e   :  { %3262 = vmatpush1.bf16.msra.mxu0 %v5812_v39  ;;  %v5899_v39 = vld [vmem:[#allocation7 + $0x228] ss:$16 sps:$4 sm:$0xff]  }
 0x31f   :  { %3263 = vmatprep.subr.bf16.mxu0 %v5820_v44  ;;  %v5941_v44 = vld [vmem:[#allocation9 + $0x60] ss:$16 sps:$4 sm:$0xff]  }
 0x322   :  { %3264 = vmatpush1.bf16.msra.mxu0 %v5818_v37  ;;  %v5904_v37 = vld [vmem:[#allocation7 + $0x20c] ss:$16 sps:$4 sm:$0xff]  }
 0x323   :  { %3265 = vmatprep.subr.bf16.mxu0 %v5826_v45  ;;  %v5946_v45 = vld [vmem:[#allocation9 + $0x44] ss:$16 sps:$4 sm:$0xff]  }
 0x326   :  { %3266 = vmatpush1.bf16.msra.mxu0 %v5824_v46  ;;  %v5902_v46 = vld [vmem:[#allocation7 + $0x208] ss:$16 sps:$4 sm:$0xff]  }
 0x327   :  { %3267 = vmatprep.subr.bf16.mxu0 %v5832_v47  ;;  %v5944_v47 = vld [vmem:[#allocation9 + $0x40] ss:$16 sps:$4 sm:$0xff]  }
 0x32a   :  { %3268 = vmatpush1.bf16.msra.mxu0 %v5830_v48  ;;  %v5907_v48 = vld [vmem:[#allocation7 + $0x3ec] ss:$16 sps:$4 sm:$0xff]  }
 0x32b   :  { %3269 = vmatprep.subr.bf16.mxu0 %v5838_v49  ;;  %v5949_v49 = vld [vmem:[#allocation9 + $0x24] ss:$16 sps:$4 sm:$0xff]  }
 0x32e   :  { %3270 = vmatpush2.bf16.msra.mxu0 %v5836_v50  ;;  %v5905_v50 = vld [vmem:[#allocation7 + $0x3e8] ss:$16 sps:$4 sm:$0xff]  }
 0x32f   :  { %3271 = vmatprep.subr.bf16.mxu0 %v5844_v51  ;;  %v5947_v51 = vld [vmem:[#allocation9 + $0x20] ss:$16 sps:$4 sm:$0xff]  }
 0x332   :  { %3272 = vmatpush2.bf16.msra.mxu0 %v5842_v52  ;;  %v5910_v52 = vld [vmem:[#allocation7 + $0x3cc] ss:$16 sps:$4 sm:$0xff]  }
 0x333   :  { %3273 = vmatprep.subr.bf16.mxu0 %v5850_v53  ;;  %v5952_v53 = vld [vmem:[#allocation9 + $0x4] ss:$16 sps:$4 sm:$0xff]  }
 0x336   :  { %3274 = vmatpush2.bf16.msra.mxu0 %v5848_v54  ;;  %v5908_v54 = vld [vmem:[#allocation7 + $0x3c8] ss:$16 sps:$4 sm:$0xff]  }
 0x337   :  { %3275 = vmatprep.subr.bf16.mxu0 %v5856_v55  ;;  %v5950_v55 = vld [vmem:[#allocation9] ss:$16 sps:$4 sm:$0xff]  }
 0x33a   :  { %3276 = vmatpush2.bf16.msra.mxu0 %v5854_v56  ;;  %v5913_v56 = vld [vmem:[#allocation7 + $0x3ac] ss:$16 sps:$4 sm:$0xff]  }
 0x33b   :  { %3277 = vmatprep.subr.bf16.mxu0 %v5862_v57  ;;  %v5955_v57 = vld [vmem:[#allocation9 + $0x1e4] ss:$16 sps:$4 sm:$0xff]  }
 0x33e   :  { %3278 = vmatpush2.bf16.msra.mxu0 %v5860_v58  ;;  %v5911_v58 = vld [vmem:[#allocation7 + $0x3a8] ss:$16 sps:$4 sm:$0xff]  }
 0x33f   :  { %3279 = vmatprep.subr.bf16.mxu0 %v5868_v59  ;;  %v5953_v59 = vld [vmem:[#allocation9 + $0x1e0] ss:$16 sps:$4 sm:$0xff]  }
 0x342   :  { %v2358_v1 = vpop.f32.mrf.mxu1  ;;  %3280 = vmatpush2.bf16.msra.mxu0 %v5866_v61  ;;  %v5958_v61 = vld [vmem:[#allocation9 + $0x1c4] ss:$16 sps:$4 sm:$0xff]  }
 0x343   :  { %v2359_v4 = vadd.f32 %v2358_v1, %v2318_v0  ;;  %3281 = vmatprep.subr.bf16.mxu0 %v5874_v63  ;;  %v5956_v63 = vld [vmem:[#allocation9 + $0x1c0] ss:$16 sps:$4 sm:$0xff]   ;;  %v5919_v0 = vld [vmem:[#allocation7 + $0x36c] ss:$16 sps:$4 sm:$0xff]   ;;  %v5961_v1 = vld [vmem:[#allocation9 + $0x1a4] ss:$16 sps:$4 sm:$0xff]  }
 0x344   :  { %v2360_v6 = vpop.f32.mrf.mxu1 }
 0x345   :  { %vm2367_vm10 = vcmp.gt.f32.partialorder %v2359_v4, 0.0  ;;  %v2371_v7 = vmul.f32 0.2, %v2359_v4  ;;  %v2361_v9 = vadd.f32 %v2360_v6, %v2320_v3  ;;  %v5959_v3 = vld [vmem:[#allocation9 + $0x1a0] ss:$16 sps:$4 sm:$0xff]  }
 0x346   :  { %v2362_v12 = vpop.f32.mrf.mxu1  ;;  %3282 = vmatpush2.bf16.msra.mxu0 %v5872_v2  ;;  %v5917_v2 = vld [vmem:[#allocation7 + $0x368] ss:$16 sps:$4 sm:$0xff]  }
 0x347   :  { %vm2368_vm11 = vcmp.gt.f32.partialorder %v2361_v9, 0.0  ;;  %v2372_v10 = vmul.f32 0.2, %v2361_v9  ;;  %3283 = vmatprep.subr.bf16.mxu0 %v5880_v5  ;;  %v2375_v14 = vsel %vm2367_vm10, %v2359_v4, %v2371_v7  ;;  %v5922_v4 = vld [vmem:[#allocation7 + $0x34c] ss:$16 sps:$4 sm:$0xff]  }
 0x348   :  { %v2363_v15 = vpop.f32.mrf.mxu1  ;;  %v6464_v20 = vpack.c.bf16 %v2375_v14, %v2375_v14  ;;  %v5964_v5 = vld [vmem:[#allocation9 + $0x184] ss:$16 sps:$4 sm:$0xff]   ;;  %v5920_v6 = vld [vmem:[#allocation7 + $0x348] ss:$16 sps:$4 sm:$0xff]   ;;  %v5962_v7 = vld [vmem:[#allocation9 + $0x180] ss:$16 sps:$4 sm:$0xff]  }
 0x349   :  { %v2376_v16 = vsel %vm2368_vm11, %v2361_v9, %v2372_v10  ;;  %v5925_v9 = vld [vmem:[#allocation7 + $0x32c] ss:$16 sps:$4 sm:$0xff]   ;;  %v5967_v12 = vld [vmem:[#allocation9 + $0x164] ss:$16 sps:$4 sm:$0xff]   ;;  %v5965_v10 = vld [vmem:[#allocation9 + $0x160] ss:$16 sps:$4 sm:$0xff]  }
 0x34a   :  { %3284 = vmatpush2.bf16.msra.mxu0 %v5878_v13  ;;  %v2509_v17 = vpack.c.bf16 %v2376_v16, %v2376_v16  ;;  %v5923_v13 = vld [vmem:[#allocation7 + $0x328] ss:$16 sps:$4 sm:$0xff]   ;;  %v5928_v14 = vld [vmem:[#allocation7 + $0x30c] ss:$16 sps:$4 sm:$0xff]   ;;  %v5970_v15 = vld [vmem:[#allocation9 + $0x144] ss:$16 sps:$4 sm:$0xff]  }
 0x34b   :  { %4141 = vmatprep.subr.bf16.mxu0 %v5931_v24  ;;  %v5926_v16 = vld [vmem:[#allocation7 + $0x308] ss:$16 sps:$4 sm:$0xff]   ;;  %v5983_v24 = vld [vmem:[#allocation9 + $0x2c0] ss:$16 sps:$4 sm:$0xff]  }
 0x34c   :  { %3244 = vmatprep.mubr.bf16.mxu1 %v2509_v17 }
 0x34d   :  { %3245 = vmatmul.mubr.bf16.vlgmr.msra.gmra.mxu1 %v6464_v20  ;;  %3286 = vmatmul.mubr.bf16.vlgmr.msra.gmra.mxu0 %v6455_v31  ;;  %v5893_v31 = vld [vmem:[#allocation7 + $0x268] ss:$16 sps:$4 sm:$0xff]  }
 0x34e   :  { %3295 = vmatpush1.bf16.msra.mxu1 %v5881_v19  ;;  %3326 = vmatprep.mubr.bf16.mxu1 %v2509_v17  ;;  %v5968_v17 = vld [vmem:[#allocation9 + $0x140] ss:$16 sps:$4 sm:$0xff]   ;;  %v5973_v19 = vld [vmem:[#allocation9 + $0x124] ss:$16 sps:$4 sm:$0xff]  }
 0x34f   :  { %3296 = vmatprep.subr.bf16.mxu1 %v5886_v21  ;;  %4142 = vmatpush1.bf16.msra.mxu0 %v5929_v23  ;;  %v5971_v21 = vld [vmem:[#allocation9 + $0x120] ss:$16 sps:$4 sm:$0xff]   ;;  %v5982_v23 = vld [vmem:[#allocation9 + $0xec] ss:$16 sps:$4 sm:$0xff]  }
 0x350   :  { %4143 = vmatprep.subr.bf16.mxu0 %v5934_v25  ;;  %v5985_v25 = vld [vmem:[#allocation9 + $0x2c4] ss:$16 sps:$4 sm:$0xff]  }
 0x352   :  { %3297 = vmatpush1.bf16.msra.mxu1 %v5884_v22  ;;  %v5976_v22 = vld [vmem:[#allocation9 + $0x104] ss:$16 sps:$4 sm:$0xff]  }
 0x353   :  { %3298 = vmatprep.subr.bf16.mxu1 %v5889_v8  ;;  %4144 = vmatpush1.bf16.msra.mxu0 %v5932_v27  ;;  %v5974_v8 = vld [vmem:[#allocation9 + $0x100] ss:$16 sps:$4 sm:$0xff]  }
 0x354   :  { %4145 = vmatprep.subr.bf16.mxu0 %v5937_v30  ;;  %v5995_v27 = vld [vmem:[#allocation9 + $0x280] ss:$16 sps:$4 sm:$0xff]  }
 0x355   :  { %v6001_v30 = vld [vmem:[#allocation9 + $0x260] ss:$16 sps:$4 sm:$0xff]  }
 0x356   :  { %3299 = vmatpush1.bf16.msra.mxu1 %v5887_v18  ;;  %v5977_v18 = vld [vmem:[#allocation9 + $0x2e0] ss:$16 sps:$4 sm:$0xff]  }
 0x357   :  { %3300 = vmatprep.subr.bf16.mxu1 %v5892_v11  ;;  %4146 = vmatpush1.bf16.msra.mxu0 %v5935_v32  ;;  %v5979_v11 = vld [vmem:[#allocation9 + $0x2e4] ss:$16 sps:$4 sm:$0xff]   ;;  %v6007_v32 = vld [vmem:[#allocation9 + $0x240] ss:$16 sps:$4 sm:$0xff]  }
 0x358   :  { %4147 = vmatprep.subr.bf16.mxu0 %v5940_v34  ;;  %v6013_v34 = vld [vmem:[#allocation9 + $0x220] ss:$16 sps:$4 sm:$0xff]  }
 0x35a   :  { %3301 = vmatpush1.bf16.msra.mxu1 %v5890_v26  ;;  %v5989_v26 = vld [vmem:[#allocation9 + $0x2a0] ss:$16 sps:$4 sm:$0xff]  }
 0x35b   :  { %3302 = vmatprep.subr.bf16.mxu1 %v5895_v29  ;;  %4148 = vmatpush1.bf16.msra.mxu0 %v5938_v36  ;;  %v5997_v29 = vld [vmem:[#allocation9 + $0x284] ss:$16 sps:$4 sm:$0xff]   ;;  %v6019_v36 = vld [vmem:[#allocation9 + $0x200] ss:$16 sps:$4 sm:$0xff]  }
 0x35c   :  { %4149 = vmatprep.subr.bf16.mxu0 %v5943_v28  ;;  %v6025_v28 = vld [vmem:[#allocation9 + $0x3e0] ss:$16 sps:$4 sm:$0xff]  }
 0x35e   :  { %3303 = vmatpush1.bf16.msra.mxu1 %v5893_v31  ;;  %v6003_v31 = vld [vmem:[#allocation9 + $0x264] ss:$16 sps:$4 sm:$0xff]  }
 0x35f   :  { %3304 = vmatprep.subr.bf16.mxu1 %v5898_v33  ;;  %4150 = vmatpush1.bf16.msra.mxu0 %v5941_v44  ;;  %v6009_v33 = vld [vmem:[#allocation9 + $0x244] ss:$16 sps:$4 sm:$0xff]   ;;  %v6031_v44 = vld [vmem:[#allocation9 + $0x3c0] ss:$16 sps:$4 sm:$0xff]  }
 0x360   :  { %4151 = vmatprep.subr.bf16.mxu0 %v5946_v45  ;;  %v6037_v45 = vld [vmem:[#allocation9 + $0x3a0] ss:$16 sps:$4 sm:$0xff]  }
 0x362   :  { %3305 = vmatpush1.bf16.msra.mxu1 %v5896_v35  ;;  %v6015_v35 = vld [vmem:[#allocation9 + $0x224] ss:$16 sps:$4 sm:$0xff]  }
 0x363   :  { %3306 = vmatprep.subr.bf16.mxu1 %v5901_v38  ;;  %4152 = vmatpush1.bf16.msra.mxu0 %v5944_v47  ;;  %v6021_v38 = vld [vmem:[#allocation9 + $0x204] ss:$16 sps:$4 sm:$0xff]   ;;  %v6043_v47 = vld [vmem:[#allocation9 + $0x380] ss:$16 sps:$4 sm:$0xff]  }
 0x364   :  { %4153 = vmatprep.subr.bf16.mxu0 %v5949_v49  ;;  %v6049_v49 = vld [vmem:[#allocation9 + $0x360] ss:$16 sps:$4 sm:$0xff]  }
 0x366   :  { %3307 = vmatpush1.bf16.msra.mxu1 %v5899_v39  ;;  %v6027_v39 = vld [vmem:[#allocation9 + $0x3e4] ss:$16 sps:$4 sm:$0xff]  }
 0x367   :  { %3308 = vmatprep.subr.bf16.mxu1 %v5904_v37  ;;  %4154 = vmatpush1.bf16.msra.mxu0 %v5947_v51  ;;  %v6033_v37 = vld [vmem:[#allocation9 + $0x3c4] ss:$16 sps:$4 sm:$0xff]   ;;  %v6055_v51 = vld [vmem:[#allocation9 + $0x340] ss:$16 sps:$4 sm:$0xff]  }
 0x368   :  { %4155 = vmatprep.subr.bf16.mxu0 %v5952_v53 }
 0x36a   :  { %3309 = vmatpush1.bf16.msra.mxu1 %v5902_v46  ;;  %v6039_v46 = vld [vmem:[#allocation9 + $0x3a4] ss:$16 sps:$4 sm:$0xff]  }
 0x36b   :  { %3310 = vmatprep.subr.bf16.mxu1 %v5907_v48  ;;  %4156 = vmatpush1.bf16.msra.mxu0 %v5950_v55  ;;  %v6045_v48 = vld [vmem:[#allocation9 + $0x384] ss:$16 sps:$4 sm:$0xff]   ;;  %v6061_v55 = vld [vmem:[#allocation9 + $0x320] ss:$16 sps:$4 sm:$0xff]  }
 0x36c   :  { %4157 = vmatprep.subr.bf16.mxu0 %v5955_v57 }
 0x36e   :  { %3311 = vmatpush2.bf16.msra.mxu1 %v5905_v50  ;;  %v6051_v50 = vld [vmem:[#allocation9 + $0x364] ss:$16 sps:$4 sm:$0xff]  }
 0x36f   :  { %3312 = vmatprep.subr.bf16.mxu1 %v5910_v52  ;;  %4158 = vmatpush2.bf16.msra.mxu0 %v5953_v59  ;;  %v6057_v52 = vld [vmem:[#allocation9 + $0x344] ss:$16 sps:$4 sm:$0xff]   ;;  %v6067_v59 = vld [vmem:[#allocation9 + $0x300] ss:$16 sps:$4 sm:$0xff]  }
 0x370   :  { %4159 = vmatprep.subr.bf16.mxu0 %v5958_v61  ;;  %v6075_v61 = vld [vmem:[#allocation9 + $0x2ec] ss:$16 sps:$4 sm:$0xff]  }
 0x372   :  { %3313 = vmatpush2.bf16.msra.mxu1 %v5908_v54  ;;  %v6063_v54 = vld [vmem:[#allocation9 + $0x324] ss:$16 sps:$4 sm:$0xff]  }
 0x373   :  { %3314 = vmatprep.subr.bf16.mxu1 %v5913_v56  ;;  %4160 = vmatpush2.bf16.msra.mxu0 %v5956_v63 }
 0x374   :  { %4161 = vmatprep.subr.bf16.mxu0 %v5961_v1 }
 0x376   :  { %3315 = vmatpush2.bf16.msra.mxu1 %v5911_v58  ;;  %v6069_v58 = vld [vmem:[#allocation9 + $0x304] ss:$16 sps:$4 sm:$0xff]  }
 0x377   :  { %3316 = vmatprep.subr.bf16.mxu1 %v5916_v60  ;;  %4162 = vmatpush2.bf16.msra.mxu0 %v5959_v3 }
 0x378   :  { %4163 = vmatprep.subr.bf16.mxu0 %v5964_v5 }
 0x37a   :  { %3317 = vmatpush2.bf16.msra.mxu1 %v5914_v62  ;;  %v6472_v62 = vld [vmem:[%s6517_s8] sm:$0xf] }
 0x37b   :  { %3318 = vmatprep.subr.bf16.mxu1 %v5919_v0  ;;  %4164 = vmatpush2.bf16.msra.mxu0 %v5962_v7  ;;  %v2514_v63 = vrot.slane %v6472_v62, %v6401_v40  ;;  %v2518_v0 = vrot.slane %v6472_v62, %v6405_v42 }
 0x37c   :  { %4165 = vmatprep.subr.bf16.mxu0 %v5967_v12 }
 0x37e   :  { %3319 = vmatpush2.bf16.msra.mxu1 %v5917_v2 }
 0x37f   :  { %3320 = vmatprep.subr.bf16.mxu1 %v5922_v4  ;;  %4166 = vmatpush2.bf16.msra.mxu0 %v5965_v10 }
 0x380   :  { %4167 = vmatprep.subr.bf16.mxu0 %v5970_v15 }
 0x382   :  { %3321 = vmatpush2.bf16.msra.mxu1 %v5920_v6 }
 0x383   :  { %3322 = vmatprep.subr.bf16.mxu1 %v5925_v9  ;;  %4168 = vmatpush2.bf16.msra.mxu0 %v5968_v17 }
 0x384   :  { %4169 = vmatprep.subr.bf16.mxu0 %v5973_v19 }
 0x386   :  { %3323 = vmatpush2.bf16.msra.mxu1 %v5923_v13 }
 0x387   :  { %3324 = vmatprep.subr.bf16.mxu1 %v5928_v14  ;;  %4170 = vmatpush2.bf16.msra.mxu0 %v5971_v21 }
 0x388   :  { %4171 = vmatprep.subr.bf16.mxu0 %v5976_v22  ;;  %v5980_v22 = vld [vmem:[#allocation9 + $0xe8] ss:$16 sps:$4 sm:$0xff]  }
 0x38a   :  { %3325 = vmatpush2.bf16.msra.mxu1 %v5926_v16 }
 0x38b   :  { %4172 = vmatpush2.bf16.msra.mxu0 %v5974_v8  ;;  %4182 = vmatprep.subr.bf16.mxu1 %v5979_v11  ;;  %v5986_v11 = vld [vmem:[#allocation9 + $0xc8] ss:$16 sps:$4 sm:$0xff]  }
 0x38c   :  { %4223 = vmatprep.subr.bf16.mxu0 %v5982_v23  ;;  %v5994_v23 = vld [vmem:[#allocation9 + $0xac] ss:$16 sps:$4 sm:$0xff]  }
 0x38d   :  { %3327 = vmatmul.mubr.bf16.vlgmr.msra.gmra.mxu1 %v6464_v20  ;;  %v5991_v20 = vld [vmem:[#allocation9 + $0x2a4] ss:$16 sps:$4 sm:$0xff]  }
 0x38e   :  { %4183 = vmatpush1.bf16.msra.mxu1 %v5977_v18  ;;  %v5988_v18 = vld [vmem:[#allocation9 + $0xcc] ss:$16 sps:$4 sm:$0xff]  }
 0x38f   :  { %4184 = vmatprep.subr.bf16.mxu1 %v5985_v25  ;;  %v6000_v25 = vld [vmem:[#allocation9 + $0x8c] ss:$16 sps:$4 sm:$0xff]  }
 0x392   :  { %4185 = vmatpush1.bf16.msra.mxu1 %v5983_v24  ;;  %v5992_v24 = vld [vmem:[#allocation9 + $0xa8] ss:$16 sps:$4 sm:$0xff]  }
 0x393   :  { %4186 = vmatprep.subr.bf16.mxu1 %v5991_v20  ;;  %v6006_v20 = vld [vmem:[#allocation9 + $0x6c] ss:$16 sps:$4 sm:$0xff]  }
 0x396   :  { %4187 = vmatpush1.bf16.msra.mxu1 %v5989_v26  ;;  %v5998_v26 = vld [vmem:[#allocation9 + $0x88] ss:$16 sps:$4 sm:$0xff]  }
 0x397   :  { %4188 = vmatprep.subr.bf16.mxu1 %v5997_v29  ;;  %v6012_v29 = vld [vmem:[#allocation9 + $0x4c] ss:$16 sps:$4 sm:$0xff]  }
 0x39a   :  { %4189 = vmatpush1.bf16.msra.mxu1 %v5995_v27  ;;  %v6004_v27 = vld [vmem:[#allocation9 + $0x68] ss:$16 sps:$4 sm:$0xff]  }
 0x39b   :  { %4190 = vmatprep.subr.bf16.mxu1 %v6003_v31  ;;  %v6018_v31 = vld [vmem:[#allocation9 + $0x2c] ss:$16 sps:$4 sm:$0xff]  }
 0x39e   :  { %4191 = vmatpush1.bf16.msra.mxu1 %v6001_v30  ;;  %v6010_v30 = vld [vmem:[#allocation9 + $0x48] ss:$16 sps:$4 sm:$0xff]  }
 0x39f   :  { %4192 = vmatprep.subr.bf16.mxu1 %v6009_v33  ;;  %v6024_v33 = vld [vmem:[#allocation9 + $0xc] ss:$16 sps:$4 sm:$0xff]  }
 0x3a2   :  { %4193 = vmatpush1.bf16.msra.mxu1 %v6007_v32  ;;  %v6016_v32 = vld [vmem:[#allocation9 + $0x28] ss:$16 sps:$4 sm:$0xff]  }
 0x3a3   :  { %4194 = vmatprep.subr.bf16.mxu1 %v6015_v35  ;;  %v6030_v35 = vld [vmem:[#allocation9 + $0x1ec] ss:$16 sps:$4 sm:$0xff]  }
 0x3a6   :  { %4195 = vmatpush1.bf16.msra.mxu1 %v6013_v34  ;;  %v6022_v34 = vld [vmem:[#allocation9 + $0x8] ss:$16 sps:$4 sm:$0xff]  }
 0x3a7   :  { %4196 = vmatprep.subr.bf16.mxu1 %v6021_v38  ;;  %v6036_v38 = vld [vmem:[#allocation9 + $0x1cc] ss:$16 sps:$4 sm:$0xff]  }
 0x3aa   :  { %4197 = vmatpush1.bf16.msra.mxu1 %v6019_v36  ;;  %v6028_v36 = vld [vmem:[#allocation9 + $0x1e8] ss:$16 sps:$4 sm:$0xff]  }
 0x3ab   :  { %4198 = vmatprep.subr.bf16.mxu1 %v6027_v39  ;;  %v6042_v39 = vld [vmem:[#allocation9 + $0x1ac] ss:$16 sps:$4 sm:$0xff]  }
 0x3ae   :  { %4199 = vmatpush2.bf16.msra.mxu1 %v6025_v28  ;;  %v6034_v28 = vld [vmem:[#allocation9 + $0x1c8] ss:$16 sps:$4 sm:$0xff]  }
 0x3af   :  { %4200 = vmatprep.subr.bf16.mxu1 %v6033_v37  ;;  %v6048_v37 = vld [vmem:[#allocation9 + $0x18c] ss:$16 sps:$4 sm:$0xff]  }
 0x3b2   :  { %4201 = vmatpush2.bf16.msra.mxu1 %v6031_v44  ;;  %v6040_v44 = vld [vmem:[#allocation9 + $0x1a8] ss:$16 sps:$4 sm:$0xff]  }
 0x3b3   :  { %4202 = vmatprep.subr.bf16.mxu1 %v6039_v46  ;;  %v6054_v46 = vld [vmem:[#allocation9 + $0x16c] ss:$16 sps:$4 sm:$0xff]  }
 0x3b6   :  { %4203 = vmatpush2.bf16.msra.mxu1 %v6037_v45  ;;  %v6046_v45 = vld [vmem:[#allocation9 + $0x188] ss:$16 sps:$4 sm:$0xff]  }
 0x3b7   :  { %4204 = vmatprep.subr.bf16.mxu1 %v6045_v48  ;;  %v6060_v48 = vld [vmem:[#allocation9 + $0x14c] ss:$16 sps:$4 sm:$0xff]  }
 0x3ba   :  { %4205 = vmatpush2.bf16.msra.mxu1 %v6043_v47  ;;  %v6052_v47 = vld [vmem:[#allocation9 + $0x168] ss:$16 sps:$4 sm:$0xff]  }
 0x3bb   :  { %4206 = vmatprep.subr.bf16.mxu1 %v6051_v50  ;;  %v6058_v50 = vld [vmem:[#allocation9 + $0x148] ss:$16 sps:$4 sm:$0xff]  }
 0x3be   :  { %4207 = vmatpush2.bf16.msra.mxu1 %v6049_v49  ;;  %v2522_v49 = vrot.slane %v6472_v62, %v6403_v41 }
 0x3bf   :  { %4208 = vmatprep.subr.bf16.mxu1 %v6057_v52  ;;  %v6066_v52 = vld [vmem:[#allocation9 + $0x12c] ss:$16 sps:$4 sm:$0xff]  }
 0x3c2   :  { %4209 = vmatpush2.bf16.msra.mxu1 %v6055_v51  ;;  %v2526_v51 = vrot.slane %v6472_v62, %v6407_v43 }
 0x3c3   :  { %4210 = vmatprep.subr.bf16.mxu1 %v6063_v54 }
 0x3c6   :  { %4211 = vmatpush2.bf16.msra.mxu1 %v6061_v55  ;;  %v6064_v55 = vld [vmem:[#allocation9 + $0x128] ss:$16 sps:$4 sm:$0xff]  }
 0x3c7   :  { %4212 = vmatprep.subr.bf16.mxu1 %v6069_v58  ;;  %v6072_v58 = vld [vmem:[#allocation9 + $0x10c] ss:$16 sps:$4 sm:$0xff]  }
 0x3ca   :  { %4213 = vmatpush2.bf16.msra.mxu1 %v6067_v59 }
 0x3cb   :  { %4264 = vmatprep.subr.bf16.mxu1 %v6075_v61 }
 0x3cd   :  { %v3205_v53 = vpop.f32.mrf.mxu0 }
 0x3ce   :  { %v3206_v1 = vadd.f32 %v3205_v53, %v2514_v63 }
 0x3cf   :  { %v3207_v56 = vpop.f32.mrf.mxu0 }
 0x3d0   :  { %v3208_v4 = vadd.f32 %v3207_v56, %v2518_v0  ;;  %v6070_v0 = vld [vmem:[#allocation9 + $0x108] ss:$16 sps:$4 sm:$0xff]  }
 0x3d1   :  { %v3209_v57 = vpop.f32.mrf.mxu0 }
 0x3d3   :  { %v3210_v60 = vpop.f32.mrf.mxu0 }
 0x40d   :  { %v3246_v2 = vpop.f32.mrf.mxu1  ;;  %v6478_v3 = vpop.f32.mrf.mxu0 }
 0x40e   :  { %v3247_v5 = vadd.f32 %v3246_v2, %v3206_v1  ;;  %v3288_v53 = vadd.f32 %v6478_v3, %v2522_v49  ;;  %v6115_v49 = vld [vmem:[#allocation9 + $0x328] ss:$16 sps:$4 sm:$0xff]  }
 0x40f   :  { %v3248_v6 = vpop.f32.mrf.mxu1  ;;  %v6480_v7 = vpop.f32.mrf.mxu0 }
 0x410   :  { %vm3335_vm12 = vcmp.gt.f32.partialorder %v3247_v5, 0.0  ;;  %v3339_v9 = vmul.f32 0.2, %v3247_v5  ;;  %v3249_v12 = vadd.f32 %v3248_v6, %v3208_v4  ;;  %v3290_v56 = vadd.f32 %v6480_v7, %v2526_v51  ;;  %v6078_v7 = vld [vmem:[#allocation9 + $0x2cc] ss:$16 sps:$4 sm:$0xff]  }
 0x411   :  { %v3250_v13 = vpop.f32.mrf.mxu1  ;;  %v3291_v10 = vpop.f32.mrf.mxu0  ;;  %v6118_v51 = vld [vmem:[#allocation9 + $0x308] ss:$16 sps:$4 sm:$0xff]  }
 0x412   :  { %vm3336_vm13 = vcmp.gt.f32.partialorder %v3249_v12, 0.0  ;;  %v3340_v14 = vmul.f32 0.2, %v3249_v12  ;;  %v3343_v15 = vsel %vm3335_vm12, %v3247_v5, %v3339_v9  ;;  %v6073_v5 = vld [vmem:[#allocation9 + $0x2e8] ss:$16 sps:$4 sm:$0xff]  }
 0x413   :  { %v3251_v16 = vpop.f32.mrf.mxu1  ;;  %v3292_v17 = vpop.f32.mrf.mxu0  ;;  %v6482_v8 = vpack.c.bf16 %v3343_v15, %v3343_v15  ;;  %v6076_v9 = vld [vmem:[#allocation9 + $0x2c8] ss:$16 sps:$4 sm:$0xff]   ;;  %v6084_v10 = vld [vmem:[#allocation9 + $0x28c] ss:$16 sps:$4 sm:$0xff]  }
 0x414   :  { %v3344_v19 = vsel %vm3336_vm13, %v3249_v12, %v3340_v14  ;;  %v6081_v12 = vld [vmem:[#allocation9 + $0x2ac] ss:$16 sps:$4 sm:$0xff]   ;;  %v6079_v13 = vld [vmem:[#allocation9 + $0x2a8] ss:$16 sps:$4 sm:$0xff]   ;;  %v6123_v16 = vld [vmem:[#allocation10 + $0x70] sm:$0xff]  }
 0x415   :  { %v3477_v21 = vpack.c.bf16 %v3344_v19, %v3344_v19  ;;  %v6121_v14 = vld [vmem:[#allocation10 + $0x78] sm:$0xff]   ;;  %v6124_v19 = vld [vmem:[#allocation10 + $0x30] sm:$0xff]  }
 0x416   :  { %v6122_v15 = vld [vmem:[#allocation10 + $0x38] sm:$0xff]  }
 0x417   :  { %4173 = vmatprep.mubr.bf16.mxu0 %v3477_v21  ;;  %v6082_v17 = vld [vmem:[#allocation9 + $0x288] ss:$16 sps:$4 sm:$0xff]  }
 0x418   :  { %4174 = vmatmul.mubr.bf16.vlgmr.msra.gmra.mxu0 %v6482_v8 }
 0x419   :  { %4224 = vmatpush1.bf16.msra.mxu0 %v5980_v22  ;;  %4255 = vmatprep.mubr.bf16.mxu0 %v3477_v21  ;;  %v6087_v21 = vld [vmem:[#allocation9 + $0x26c] ss:$16 sps:$4 sm:$0xff]  }
 0x41a   :  { %4225 = vmatprep.subr.bf16.mxu0 %v5988_v18  ;;  %v6125_v22 = vld [vmem:[#allocation10 + $0x68] sm:$0xff]  }
 0x41b   :  { %v6126_v18 = vld [vmem:[#allocation10 + $0x28] sm:$0xff]  }
 0x41d   :  { %4226 = vmatpush1.bf16.msra.mxu0 %v5986_v11  ;;  %v6090_v11 = vld [vmem:[#allocation9 + $0x24c] ss:$16 sps:$4 sm:$0xff]  }
 0x41e   :  { %4227 = vmatprep.subr.bf16.mxu0 %v5994_v23  ;;  %v6127_v23 = vld [vmem:[#allocation10 + $0x60] sm:$0xff]  }
 0x421   :  { %4228 = vmatpush1.bf16.msra.mxu0 %v5992_v24  ;;  %v6088_v24 = vld [vmem:[#allocation9 + $0x248] ss:$16 sps:$4 sm:$0xff]  }
 0x422   :  { %4229 = vmatprep.subr.bf16.mxu0 %v6000_v25  ;;  %v6128_v25 = vld [vmem:[#allocation10 + $0x20] sm:$0xff]  }
 0x425   :  { %4230 = vmatpush1.bf16.msra.mxu0 %v5998_v26  ;;  %v6093_v26 = vld [vmem:[#allocation9 + $0x22c] ss:$16 sps:$4 sm:$0xff]  }
 0x426   :  { %4231 = vmatprep.subr.bf16.mxu0 %v6006_v20  ;;  %v6129_v20 = vld [vmem:[#allocation10 + $0x58] sm:$0xff]  }
 0x429   :  { %4232 = vmatpush1.bf16.msra.mxu0 %v6004_v27  ;;  %v6091_v27 = vld [vmem:[#allocation9 + $0x228] ss:$16 sps:$4 sm:$0xff]  }
 0x42a   :  { %4233 = vmatprep.subr.bf16.mxu0 %v6012_v29  ;;  %v6130_v29 = vld [vmem:[#allocation10 + $0x18] sm:$0xff]  }
 0x42d   :  { %4234 = vmatpush1.bf16.msra.mxu0 %v6010_v30  ;;  %v6096_v30 = vld [vmem:[#allocation9 + $0x20c] ss:$16 sps:$4 sm:$0xff]  }
 0x42e   :  { %4235 = vmatprep.subr.bf16.mxu0 %v6018_v31  ;;  %v6131_v31 = vld [vmem:[#allocation10 + $0x50] sm:$0xff]  }
 0x431   :  { %4236 = vmatpush1.bf16.msra.mxu0 %v6016_v32  ;;  %v6094_v32 = vld [vmem:[#allocation9 + $0x208] ss:$16 sps:$4 sm:$0xff]  }
 0x432   :  { %4237 = vmatprep.subr.bf16.mxu0 %v6024_v33  ;;  %v6099_v33 = vld [vmem:[#allocation9 + $0x3ec] ss:$16 sps:$4 sm:$0xff]  }
 0x435   :  { %4238 = vmatpush1.bf16.msra.mxu0 %v6022_v34  ;;  %v6097_v34 = vld [vmem:[#allocation9 + $0x3e8] ss:$16 sps:$4 sm:$0xff]  }
 0x436   :  { %4239 = vmatprep.subr.bf16.mxu0 %v6030_v35  ;;  %v6102_v35 = vld [vmem:[#allocation9 + $0x3cc] ss:$16 sps:$4 sm:$0xff]  }
 0x439   :  { %4240 = vmatpush2.bf16.msra.mxu0 %v6028_v36  ;;  %v6100_v36 = vld [vmem:[#allocation9 + $0x3c8] ss:$16 sps:$4 sm:$0xff]  }
 0x43a   :  { %4241 = vmatprep.subr.bf16.mxu0 %v6036_v38  ;;  %v6105_v38 = vld [vmem:[#allocation9 + $0x3ac] ss:$16 sps:$4 sm:$0xff]  }
 0x43d   :  { %4242 = vmatpush2.bf16.msra.mxu0 %v6034_v28  ;;  %v6103_v28 = vld [vmem:[#allocation9 + $0x3a8] ss:$16 sps:$4 sm:$0xff]  }
 0x43e   :  { %4243 = vmatprep.subr.bf16.mxu0 %v6042_v39  ;;  %v6108_v39 = vld [vmem:[#allocation9 + $0x38c] ss:$16 sps:$4 sm:$0xff]  }
 0x441   :  { %4244 = vmatpush2.bf16.msra.mxu0 %v6040_v44  ;;  %v6106_v44 = vld [vmem:[#allocation9 + $0x388] ss:$16 sps:$4 sm:$0xff]  }
 0x442   :  { %4245 = vmatprep.subr.bf16.mxu0 %v6048_v37  ;;  %v6111_v37 = vld [vmem:[#allocation9 + $0x36c] ss:$16 sps:$4 sm:$0xff]  }
 0x445   :  { %4246 = vmatpush2.bf16.msra.mxu0 %v6046_v45  ;;  %v6109_v45 = vld [vmem:[#allocation9 + $0x368] ss:$16 sps:$4 sm:$0xff]  }
 0x446   :  { %4247 = vmatprep.subr.bf16.mxu0 %v6054_v46  ;;  %v6114_v46 = vld [vmem:[#allocation9 + $0x34c] ss:$16 sps:$4 sm:$0xff]  }
 0x449   :  { %4248 = vmatpush2.bf16.msra.mxu0 %v6052_v47  ;;  %v6112_v47 = vld [vmem:[#allocation9 + $0x348] ss:$16 sps:$4 sm:$0xff]  }
 0x44a   :  { %4249 = vmatprep.subr.bf16.mxu0 %v6060_v48  ;;  %v6117_v48 = vld [vmem:[#allocation9 + $0x32c] ss:$16 sps:$4 sm:$0xff]  }
 0x44d   :  { %v3328_v54 = vpop.f32.mrf.mxu1  ;;  %4250 = vmatpush2.bf16.msra.mxu0 %v6058_v50  ;;  %v6120_v50 = vld [vmem:[#allocation9 + $0x30c] ss:$16 sps:$4 sm:$0xff]  }
 0x44e   :  { %v3329_v57 = vadd.f32 %v3328_v54, %v3288_v53  ;;  %4251 = vmatprep.subr.bf16.mxu0 %v6066_v52  ;;  %v6132_v52 = vld [vmem:[#allocation10 + $0x10] sm:$0xff]   ;;  %v6133_v53 = vld [vmem:[#allocation10 + $0x48] sm:$0xff]  }
 0x44f   :  { %v3330_v59 = vpop.f32.mrf.mxu1  ;;  %v6134_v54 = vld [vmem:[#allocation10 + $0x8] sm:$0xff]  }
 0x450   :  { %vm3337_vm14 = vcmp.gt.f32.partialorder %v3329_v57, 0.0  ;;  %v3341_v60 = vmul.f32 0.2, %v3329_v57  ;;  %v3331_v61 = vadd.f32 %v3330_v59, %v3290_v56  ;;  %v6136_v56 = vld [vmem:[#allocation10] sm:$0xff]   ;;  %v6139_v59 = vld [vmem:[#allocation10 + $0xf0] sm:$0xff]  }
 0x451   :  { %v3332_v63 = vpop.f32.mrf.mxu1  ;;  %4252 = vmatpush2.bf16.msra.mxu0 %v6064_v55  ;;  %v6135_v55 = vld [vmem:[#allocation10 + $0x40] sm:$0xff]  }
 0x452   :  { %vm3338_vm15 = vcmp.gt.f32.partialorder %v3331_v61, 0.0  ;;  %v3342_v62 = vmul.f32 0.2, %v3331_v61  ;;  %4253 = vmatprep.subr.bf16.mxu0 %v6072_v58  ;;  %v3345_v1 = vsel %vm3337_vm14, %v3329_v57, %v3341_v60  ;;  %v6137_v57 = vld [vmem:[#allocation10 + $0xf8] sm:$0xff]   ;;  %v6140_v60 = vld [vmem:[#allocation10 + $0xb0] sm:$0xff]   ;;  %v6142_v63 = vld [vmem:[#allocation10 + $0xa8] sm:$0xff]  }
 0x453   :  { %v3333_v2 = vpop.f32.mrf.mxu1  ;;  %v6491_v6 = vpack.c.bf16 %v3345_v1, %v3345_v1  ;;  %v6138_v58 = vld [vmem:[#allocation10 + $0xb8] sm:$0xff]  }
 0x454   :  { %v3346_v3 = vsel %vm3338_vm15, %v3331_v61, %v3342_v62  ;;  %v6141_v61 = vld [vmem:[#allocation10 + $0xe8] sm:$0xff]   ;;  %v6144_v62 = vld [vmem:[#allocation10 + $0xa0] sm:$0xff]   ;;  %v6145_v1 = vld [vmem:[#allocation10 + $0xd8] sm:$0xff]  }
 0x455   :  { %4254 = vmatpush2.bf16.msra.mxu0 %v6070_v0  ;;  %v3479_v4 = vpack.c.bf16 %v3346_v3, %v3346_v3  ;;  %v6143_v0 = vld [vmem:[#allocation10 + $0xe0] sm:$0xff]   ;;  %v6146_v2 = vld [vmem:[#allocation10 + $0x98] sm:$0xff]   ;;  %v6147_v3 = vld [vmem:[#allocation10 + $0xd0] sm:$0xff]  }
 0x456   :  { %5250 = vmatprep.subr.bf16.mxu0 %v6121_v14  ;;  %v6152_v14 = vld [vmem:[#allocation10 + $0x80] sm:$0xff]  }
 0x457   :  { %4214 = vmatprep.mubr.bf16.mxu1 %v3479_v4 }
 0x458   :  { %4215 = vmatmul.mubr.bf16.vlgmr.msra.gmra.mxu1 %v6491_v6  ;;  %4256 = vmatmul.mubr.bf16.vlgmr.msra.gmra.mxu0 %v6482_v8  ;;  %v6085_v8 = vld [vmem:[#allocation9 + $0x268] ss:$16 sps:$4 sm:$0xff]  }
 0x459   :  { %4265 = vmatpush1.bf16.msra.mxu1 %v6073_v5  ;;  %4296 = vmatprep.mubr.bf16.mxu1 %v3479_v4  ;;  %v6148_v4 = vld [vmem:[#allocation10 + $0x90] sm:$0xff]  }
 0x45a   :  { %4266 = vmatprep.subr.bf16.mxu1 %v6078_v7  ;;  %5251 = vmatpush3.bf16.msra.mxu0 %v6122_v15  ;;  %v3475_v15 = vld [vmem:[%s6519_s10] sm:$0xf] }
 0x45b   :  { %5252 = vmatprep.subr.bf16.mxu0 %v6123_v16  ;;  %v3484_v16 = vrot.slane %v3475_v15, %v6401_v40 }
 0x45d   :  { %4267 = vmatpush1.bf16.msra.mxu1 %v6076_v9  ;;  %v6150_v9 = vld [vmem:[#allocation10 + $0x88] sm:$0xff]  }
 0x45e   :  { %4268 = vmatprep.subr.bf16.mxu1 %v6081_v12  ;;  %5253 = vmatpush3.bf16.msra.mxu0 %v6124_v19 }
 0x45f   :  { %5254 = vmatprep.subr.bf16.mxu0 %v6125_v22 }
 0x461   :  { %4269 = vmatpush1.bf16.msra.mxu1 %v6079_v13  ;;  %v6151_v13 = vld [vmem:[#allocation10 + $0xc0] sm:$0xff]  }
 0x462   :  { %4270 = vmatprep.subr.bf16.mxu1 %v6084_v10  ;;  %5255 = vmatpush3.bf16.msra.mxu0 %v6126_v18 }
 0x463   :  { %5256 = vmatprep.subr.bf16.mxu0 %v6127_v23 }
 0x465   :  { %4271 = vmatpush1.bf16.msra.mxu1 %v6082_v17  ;;  %v3488_v17 = vrot.slane %v3475_v15, %v6405_v42 }
 0x466   :  { %4272 = vmatprep.subr.bf16.mxu1 %v6087_v21  ;;  %5257 = vmatpush3.bf16.msra.mxu0 %v6128_v25 }
 0x467   :  { %5258 = vmatprep.subr.bf16.mxu0 %v6129_v20 }
 0x469   :  { %4273 = vmatpush1.bf16.msra.mxu1 %v6085_v8 }
 0x46a   :  { %4274 = vmatprep.subr.bf16.mxu1 %v6090_v11  ;;  %5259 = vmatpush3.bf16.msra.mxu0 %v6130_v29 }
 0x46b   :  { %5260 = vmatprep.subr.bf16.mxu0 %v6131_v31 }
 0x46d   :  { %4275 = vmatpush1.bf16.msra.mxu1 %v6088_v24 }
 0x46e   :  { %4276 = vmatprep.subr.bf16.mxu1 %v6093_v26  ;;  %5261 = vmatpush3.bf16.msra.mxu0 %v6132_v52 }
 0x46f   :  { %5262 = vmatprep.subr.bf16.mxu0 %v6133_v53 }
 0x471   :  { %4277 = vmatpush1.bf16.msra.mxu1 %v6091_v27 }
 0x472   :  { %4278 = vmatprep.subr.bf16.mxu1 %v6096_v30  ;;  %5263 = vmatpush3.bf16.msra.mxu0 %v6134_v54 }
 0x473   :  { %5264 = vmatprep.subr.bf16.mxu0 %v6135_v55  ;;  %v5217_v55 = vld [vmem:[%s6521_s12] ss:$0 sm:$0xff] }
 0x475   :  { %4279 = vmatpush1.bf16.msra.mxu1 %v6094_v32 }
 0x476   :  { %4280 = vmatprep.subr.bf16.mxu1 %v6099_v33  ;;  %5265 = vmatpush3.bf16.msra.mxu0 %v6136_v56  ;;  %v3492_v33 = vrot.slane %v3475_v15, %v6403_v41 }
 0x479   :  { %4281 = vmatpush2.bf16.msra.mxu1 %v6097_v34  ;;  %v3496_v34 = vrot.slane %v3475_v15, %v6407_v43 }
 0x47a   :  { %4282 = vmatprep.subr.bf16.mxu1 %v6102_v35 }
 0x47d   :  { %4283 = vmatpush2.bf16.msra.mxu1 %v6100_v36 }
 0x47e   :  { %4284 = vmatprep.subr.bf16.mxu1 %v6105_v38 }
 0x481   :  { %4285 = vmatpush2.bf16.msra.mxu1 %v6103_v28 }
 0x482   :  { %4286 = vmatprep.subr.bf16.mxu1 %v6108_v39 }
 0x485   :  { %4287 = vmatpush2.bf16.msra.mxu1 %v6106_v44 }
 0x486   :  { %4288 = vmatprep.subr.bf16.mxu1 %v6111_v37 }
 0x489   :  { %4289 = vmatpush2.bf16.msra.mxu1 %v6109_v45 }
 0x48a   :  { %4290 = vmatprep.subr.bf16.mxu1 %v6114_v46 }
 0x48d   :  { %4291 = vmatpush2.bf16.msra.mxu1 %v6112_v47 }
 0x48e   :  { %4292 = vmatprep.subr.bf16.mxu1 %v6117_v48 }
 0x491   :  { %4293 = vmatpush2.bf16.msra.mxu1 %v6115_v49 }
 0x492   :  { %4294 = vmatprep.subr.bf16.mxu1 %v6120_v50 }
 0x495   :  { %4295 = vmatpush2.bf16.msra.mxu1 %v6118_v51 }
 0x496   :  { %5272 = vmatprep.subr.bf16.mxu1 %v6137_v57 }
 0x498   :  { %4297 = vmatmul.mubr.bf16.vlgmr.msra.gmra.mxu1 %v6491_v6  ;;  %v6149_v6 = vld [vmem:[#allocation10 + $0xc8] sm:$0xff]  }
 0x499   :  { %5273 = vmatpush3.bf16.msra.mxu1 %v6138_v58 }
 0x49a   :  { %5274 = vmatprep.subr.bf16.mxu1 %v6139_v59 }
 0x49d   :  { %5275 = vmatpush3.bf16.msra.mxu1 %v6140_v60 }
 0x49e   :  { %5276 = vmatprep.subr.bf16.mxu1 %v6141_v61 }
 0x4a1   :  { %5277 = vmatpush3.bf16.msra.mxu1 %v6142_v63 }
 0x4a2   :  { %5278 = vmatprep.subr.bf16.mxu1 %v6143_v0 }
 0x4a5   :  { %5279 = vmatpush3.bf16.msra.mxu1 %v6144_v62 }
 0x4a6   :  { %5280 = vmatprep.subr.bf16.mxu1 %v6145_v1 }
 0x4a9   :  { %5281 = vmatpush3.bf16.msra.mxu1 %v6146_v2 }
 0x4aa   :  { %5282 = vmatprep.subr.bf16.mxu1 %v6147_v3 }
 0x4ad   :  { %5283 = vmatpush3.bf16.msra.mxu1 %v6148_v4 }
 0x4ae   :  { %5284 = vmatprep.subr.bf16.mxu1 %v6149_v6 }
 0x4b1   :  { %5285 = vmatpush3.bf16.msra.mxu1 %v6150_v9 }
 0x4b2   :  { %5286 = vmatprep.subr.bf16.mxu1 %v6151_v13 }
 0x4b5   :  { %5287 = vmatpush3.bf16.msra.mxu1 %v6152_v14 }
 0x4d8   :  { %v4175_v5 = vpop.f32.mrf.mxu0 }
 0x4d9   :  { %v4176_v19 = vadd.f32 %v4175_v5, %v3484_v16 }
 0x4da   :  { %v4177_v7 = vpop.f32.mrf.mxu0 }
 0x4db   :  { %v4178_v8 = vadd.f32 %v4177_v7, %v3488_v17 }
 0x4dc   :  { %v4179_v12 = vpop.f32.mrf.mxu0 }
 0x4de   :  { %v4180_v10 = vpop.f32.mrf.mxu0 }
 0x518   :  { %v4216_v21 = vpop.f32.mrf.mxu1  ;;  %v4257_v22 = vpop.f32.mrf.mxu0 }
 0x519   :  { %v4217_v18 = vadd.f32 %v4216_v21, %v4176_v19  ;;  %v4258_v35 = vadd.f32 %v4257_v22, %v3492_v33 }
 0x51a   :  { %v4218_v11 = vpop.f32.mrf.mxu1  ;;  %v4259_v23 = vpop.f32.mrf.mxu0 }
 0x51b   :  { %vm4305_vm0 = vcmp.gt.f32.partialorder %v4217_v18, 0.0  ;;  %v4309_v24 = vmul.f32 0.2, %v4217_v18  ;;  %v4219_v25 = vadd.f32 %v4218_v11, %v4178_v8  ;;  %v4260_v38 = vadd.f32 %v4259_v23, %v3496_v34 }
 0x51c   :  { %v4220_v26 = vpop.f32.mrf.mxu1  ;;  %v4261_v20 = vpop.f32.mrf.mxu0 }
 0x51d   :  { %vm4306_vm1 = vcmp.gt.f32.partialorder %v4219_v25, 0.0  ;;  %v4310_v27 = vmul.f32 0.2, %v4219_v25  ;;  %v4313_v29 = vsel %vm4305_vm0, %v4217_v18, %v4309_v24 }
 0x51e   :  { %v4221_v30 = vpop.f32.mrf.mxu1  ;;  %v4262_v31 = vpop.f32.mrf.mxu0  ;;  %v4382_v42 = vpack.c.bf16 %v4313_v29, %v4313_v29 }
 0x51f   :  { %v4314_v40 = vsel %vm4306_vm1, %v4219_v25, %v4310_v27 }
 0x520   :  { %v4383_v32 = vpack.c.bf16 %v4314_v40, %v4314_v40 }
 0x522   :  { %4616 = vmatprep.mubr.bf16.mxu0 %v4383_v32 }
 0x523   :  { %4617 = vmatmul.mubr.bf16.vlgmr.msra.gmra.mxu0 %v4382_v42 }
 0x558   :  { %v4298_v36 = vpop.f32.mrf.mxu1 }
 0x559   :  { %v4299_v28 = vadd.f32 %v4298_v36, %v4258_v35 }
 0x55a   :  { %v4300_v39 = vpop.f32.mrf.mxu1 }
 0x55b   :  { %vm4307_vm2 = vcmp.gt.f32.partialorder %v4299_v28, 0.0  ;;  %v4311_v44 = vmul.f32 0.2, %v4299_v28  ;;  %v4301_v37 = vadd.f32 %v4300_v39, %v4260_v38 }
 0x55c   :  { %v4302_v45 = vpop.f32.mrf.mxu1 }
 0x55d   :  { %vm4308_vm3 = vcmp.gt.f32.partialorder %v4301_v37, 0.0  ;;  %v4312_v46 = vmul.f32 0.2, %v4301_v37  ;;  %v4315_v47 = vsel %vm4307_vm2, %v4299_v28, %v4311_v44 }
 0x55e   :  { %v4303_v48 = vpop.f32.mrf.mxu1  ;;  %v4384_v51 = vpack.c.bf16 %v4315_v47, %v4315_v47 }
 0x55f   :  { %v4316_v49 = vsel %vm4308_vm3, %v4301_v37, %v4312_v46 }
 0x560   :  { %v4385_v50 = vpack.c.bf16 %v4316_v49, %v4316_v49 }
 0x562   :  { %4656 = vmatprep.mubr.bf16.mxu1 %v4385_v50 }
 0x563   :  { %4657 = vmatmul.mubr.bf16.vlgmr.msra.gmra.mxu1 %v4384_v51 }
 0x5e3   :  { %v5266_v41 = vpop.f32.mrf.mxu0 }
 0x5e5   :  { %v5267_v43 = vpop.f32.mrf.mxu0 }
 0x5e6   :  { %v5268_v54 = vadd.f32 %v5267_v43, %v5266_v41 }
 0x5e7   :  { %v5269_v52 = vpop.f32.mrf.mxu0 }
 0x5e8   :  { %v4619_v58 = vadd.f32 %v5268_v54, %v5217_v55 }
 0x5e9   :  { %v5270_v53 = vpop.f32.mrf.mxu0 }
 0x623   :  { %v5288_v56 = vpop.f32.mrf.mxu1 }
 0x625   :  { %v5289_v57 = vpop.f32.mrf.mxu1 }
 0x626   :  { %v5290_v59 = vadd.f32 %v5289_v57, %v5288_v56 }
 0x627   :  { %v5291_v60 = vpop.f32.mrf.mxu1 }
 0x628   :  { %v4659_v61 = vadd.f32 %v5290_v59, %v4619_v58 }
 0x629   :  { %v5292_v63 = vpop.f32.mrf.mxu1 }
 0x62a   :  { %4664 = vst [vmem:[%s6522_s13] sm:$0xff] %v4659_v61 }
 0x62b   :  { %4669 = vsyncpa [#allocation3], 1 }
 0x62c   :  { %4670 = vsyncpa [#allocation5], 1 }
 0x62d   :  { %4671 = vsyncpa [#allocation8], 1 }
 0x62e   :  { %4672 = vsyncpa [#allocation11], 1 }

</bundles_post_ra>
